<compile_context>
chip_gen: v5e
topology: v5e:2x2
jax: 0.10.0
libtpu: 0.0.40
codegen_flags: <defaults>
</compile_context>

<pallas_src>
import math

import jax
import jax.numpy as jnp
from jax.experimental import pallas as pl
from jax.experimental.pallas import tpu as pltpu

BATCH_SIZE = 2
EMBEDDING_DIM = 128
NUM_HEADS = 8
HEAD_DIM = EMBEDDING_DIM // NUM_HEADS


def _mha_kernel(x_ref, kv_ref, wq_ref, wk_ref, wv_ref, mask_ref, o_ref):
    """One (batch, query-tile) grid step of the multi-head attention forward.

    Block shapes:
      x_ref    : (1, TQ, E)   query-side activations
      kv_ref   : (1, SK, E)   key/value-side activations (full KV sequence)
      w*_ref   : (E, E)       head-blocked projection weights (see wrapper)
      mask_ref : (1, TQ, SK)  additive attention mask (0 / -1000)
      o_ref    : (1, TQ, E)   head-blocked attention output
    """
    x = x_ref[0].astype(jnp.float32)              # (TQ, E)
    kv = kv_ref[0].astype(jnp.float32)            # (SK, E)
    add_mask = mask_ref[0].astype(jnp.float32)    # (TQ, SK)

    # Dense, lane-wide (E = 128) projection matmuls on the MXU.
    q = jnp.dot(x, wq_ref[...].astype(jnp.float32),
                preferred_element_type=jnp.float32)        # (TQ, E)
    k = jnp.dot(kv, wk_ref[...].astype(jnp.float32),
                preferred_element_type=jnp.float32)        # (SK, E)
    v = jnp.dot(kv, wv_ref[...].astype(jnp.float32),
                preferred_element_type=jnp.float32)        # (SK, E)

    inv_sqrt_d = 1.0 / math.sqrt(HEAD_DIM)

    head_outs = []
    for h in range(NUM_HEADS):                    # static unroll over heads
        lo, hi = h * HEAD_DIM, (h + 1) * HEAD_DIM
        qh = q[:, lo:hi]                          # (TQ, Dh) contiguous lanes
        kh = k[:, lo:hi]                          # (SK, Dh)
        vh = v[:, lo:hi]                          # (SK, Dh)

        # scores = qh @ kh^T -> (TQ, SK)
        s = jax.lax.dot_general(qh, kh, (((1,), (1,)), ((), ())),
                                preferred_element_type=jnp.float32)
        s = s * inv_sqrt_d + add_mask

        # Row softmax; one reciprocal per row (EUP) instead of broadcast divide.
        m = jnp.max(s, axis=-1, keepdims=True)
        p = jnp.exp(s - m)
        denom = jnp.sum(p, axis=-1, keepdims=True)
        p = p * pl.reciprocal(denom, approx=False)

        head_outs.append(jnp.dot(p, vh, preferred_element_type=jnp.float32))

    # Single lane-dense (TQ, 128) store.
    o_ref[0] = jnp.concatenate(head_outs, axis=-1).astype(o_ref.dtype)


def _head_block_weight(w):
    # Module's head split takes strided columns (col = d*H + h).  Pre-permute
    # so head h owns the contiguous column block [h*Dh, (h+1)*Dh).
    e = w.shape[0]
    return jnp.transpose(w.reshape(e, HEAD_DIM, NUM_HEADS), (0, 2, 1)).reshape(e, e)


def _build_additive_mask(mask_source, mask_target, masked, has_encoder_output,
                         batch, seq_q, seq_kv):
    """The module's three masking branches as one (B, Sq, Sk) float32 additive
    mask (identical across heads in every branch)."""
    if not masked:
        # Encoder self-attention: a (B*H, Sk) mask is added to (B*H, Sq, Sk)
        # scores; torch's broadcasting aligns it with the (q, k) axes, which
        # only works when Sq == B*H.  jnp broadcasting reproduces that rule.
        add_src = jnp.where(mask_source == 0, -1000.0, 0.0).astype(jnp.float32)
        m2d = jnp.repeat(add_src[:, None, :], NUM_HEADS, axis=1)
        m2d = m2d.reshape(batch * NUM_HEADS, seq_kv)
        return jnp.zeros((batch, seq_q, seq_kv), jnp.float32) + m2d
    if not has_encoder_output:
        # Decoder masked self-attention: pure causal -1000 above the diagonal
        # (the target token mask is built then discarded by the module).
        causal = jnp.triu(jnp.full((seq_q, seq_q), -1000.0, jnp.float32), k=1)
        return jnp.broadcast_to(causal[None], (batch, seq_q, seq_q))
    # Cross-attention: per-query additive mask from the target token mask.
    add_tgt = jnp.where(mask_target == 0, -1000.0, 0.0).astype(jnp.float32)
    return jnp.broadcast_to(add_tgt[:, :, None], (batch, seq_q, seq_kv))


def attention_layer_forward(input_embeddings, token_attention_masks_source,
                            token_attention_masks_target,
                            encoder_output_embedding, masked,
                            w_query, w_key, w_value):
    b, seq_q, e = input_embeddings.shape
    kv_input = (input_embeddings if encoder_output_embedding is None
                else encoder_output_embedding)
    seq_kv = kv_input.shape[1]

    add_mask = _build_additive_mask(
        token_attention_masks_source, token_attention_masks_target, masked,
        encoder_output_embedding is not None, b, seq_q, seq_kv)

    wq_p = _head_block_weight(w_query)
    wk_p = _head_block_weight(w_key)
    wv_p = _head_block_weight(w_value)

    # Query-axis tiling keeps VMEM usage shape-independent for long sequences
    # while degenerating to a single full tile for small ones.
    tq = 128 if seq_q % 128 == 0 else seq_q
    grid = (b, seq_q // tq)

    o_blocked = pl.pallas_call(
        _mha_kernel,
        out_shape=jax.ShapeDtypeStruct((b, seq_q, e), input_embeddings.dtype),
        grid_spec=pltpu.PrefetchScalarGridSpec(
            num_scalar_prefetch=0,
            grid=grid,
            in_specs=[
                pl.BlockSpec((1, tq, e), lambda bi, qi: (bi, qi, 0)),
                pl.BlockSpec((1, seq_kv, e), lambda bi, qi: (bi, 0, 0)),
                pl.BlockSpec((e, e), lambda bi, qi: (0, 0)),
                pl.BlockSpec((e, e), lambda bi, qi: (0, 0)),
                pl.BlockSpec((e, e), lambda bi, qi: (0, 0)),
                pl.BlockSpec((1, tq, seq_kv), lambda bi, qi: (bi, qi, 0)),
            ],
            out_specs=pl.BlockSpec((1, tq, e), lambda bi, qi: (bi, qi, 0)),
        ),
        compiler_params=pltpu.CompilerParams(
            dimension_semantics=("parallel", "parallel"),
            vmem_limit_bytes=48 * 1024 * 1024,
        ),
    )(input_embeddings, kv_input, wq_p, wk_p, wv_p, add_mask)
    # TODO(synk): K/V are kept whole per grid step; very long KV sequences
    # would need flash-style online-softmax tiling over the key axis.

    # Undo the head-blocked column layout to match the module's interleaved
    # output order: out[..., d*H + h] = (head h, dim d).
    o = o_blocked.reshape(b, seq_q, NUM_HEADS, HEAD_DIM)
    o = jnp.transpose(o, (0, 1, 3, 2))
    return o.reshape(b, seq_q, e)


def _reference_forward(input_embeddings, mask_source, mask_target,
                       encoder_output_embedding, masked,
                       w_query, w_key, w_value):
    """Pure-JAX mirror of the PyTorch forward (interleaved head split)."""
    b, seq_q, e = input_embeddings.shape
    h, dh = NUM_HEADS, HEAD_DIM
    hi = jax.lax.Precision.HIGHEST

    def split_heads(t):
        bb, ss, _ = t.shape
        t = t.reshape(bb, ss, dh, h)
        t = jnp.swapaxes(t, 2, 3)
        t = jnp.swapaxes(t, 1, 2)
        return t.reshape(bb * h, ss, dh)

    q = jnp.matmul(input_embeddings, w_query, precision=hi)
    kv_in = (input_embeddings if encoder_output_embedding is None
             else encoder_output_embedding)
    k = jnp.matmul(kv_in, w_key, precision=hi)
    v = jnp.matmul(kv_in, w_value, precision=hi)
    nq, nk, nv = split_heads(q), split_heads(k), split_heads(v)
    seq_kv = kv_in.shape[1]

    scores = jnp.einsum('bqd,bkd->bqk', nq, nk, precision=hi) / math.sqrt(dh)
    if not masked:
        m = jnp.where(mask_source == 0, -1000.0, 0.0).astype(jnp.float32)
        m = jnp.repeat(m[:, None, :], h, axis=1).reshape(b * h, seq_kv)
        scores = scores + m                 # same broadcasting rule as torch
    elif encoder_output_embedding is None:
        causal = jnp.triu(jnp.full((seq_q, seq_q), -1000.0, jnp.float32), k=1)
        scores = scores + causal[None]
    else:
        m = jnp.where(mask_target == 0, -1000.0, 0.0).astype(jnp.float32)
        m = jnp.repeat(m[:, None, :], h, axis=1).reshape(b * h, seq_q)
        scores = scores + m[:, :, None]
    probs = jax.nn.softmax(scores, axis=2)
    out = jnp.einsum('bqk,bkd->bqd', probs, nv, precision=hi)
    out = out.reshape(b, h, seq_q, dh)
    out = jnp.swapaxes(out, 1, 2)
    out = jnp.swapaxes(out, 2, 3)
    return out.reshape(b, seq_q, e)


if __name__ == "__main__":
    key = jax.random.PRNGKey(0)
    k_enc, k_dec, k_eo, k_ms, k_mt, k_wq, k_wk, k_wv = jax.random.split(key, 8)

    # S_SRC == BATCH_SIZE * NUM_HEADS so the module's encoder-branch mask
    # broadcasting is well defined (it requires Sq == B*H, as in torch).
    S_SRC, S_TGT = 16, 8

    enc_in = 0.1 * jax.random.normal(
        k_enc, (BATCH_SIZE, S_SRC, EMBEDDING_DIM), jnp.float32)
    dec_in = 0.1 * jax.random.normal(
        k_dec, (BATCH_SIZE, S_TGT, EMBEDDING_DIM), jnp.float32)
    enc_out = 0.1 * jax.random.normal(
        k_eo, (BATCH_SIZE, S_SRC, EMBEDDING_DIM), jnp.float32)

    mask_src = jax.random.bernoulli(k_ms, 0.8, (BATCH_SIZE, S_SRC)).astype(jnp.int32)
    mask_tgt = jax.random.bernoulli(k_mt, 0.8, (BATCH_SIZE, S_TGT)).astype(jnp.int32)

    w_query = jax.random.uniform(k_wq, (EMBEDDING_DIM, EMBEDDING_DIM), jnp.float32)
    w_key = jax.random.uniform(k_wk, (EMBEDDING_DIM, EMBEDDING_DIM), jnp.float32)
    w_value = jax.random.uniform(k_wv, (EMBEDDING_DIM, EMBEDDING_DIM), jnp.float32)

    cases = [
        ("encoder_self_attn", enc_in, None, False),
        ("decoder_masked_self_attn", dec_in, None, True),
        ("decoder_cross_attn", dec_in, enc_out, True),
    ]
    for name, x_in, eo, masked in cases:
        out = attention_layer_forward(x_in, mask_src, mask_tgt, eo, masked,
                                      w_query, w_key, w_value)
        out = jax.block_until_ready(out)
        ref = _reference_forward(x_in, mask_src, mask_tgt, eo, masked,
                                 w_query, w_key, w_value)
        assert out.shape == ref.shape, name
        max_err = float(jnp.max(jnp.abs(out - ref)))
        assert jnp.allclose(out, ref, atol=1e-3, rtol=1e-3), (name, max_err)

    print("KERNEL_OK")
</pallas_src>

<mosaic_0001>
module attributes {stable_mosaic.version = 11 : i64} {
  func.func @_mha_kernel(%arg0: i32, %arg1: i32, %arg2: memref<1x16x128xf32, #tpu.memory_space<vmem>>, %arg3: memref<1x16x128xf32, #tpu.memory_space<vmem>>, %arg4: memref<128x128xf32, #tpu.memory_space<vmem>>, %arg5: memref<128x128xf32, #tpu.memory_space<vmem>>, %arg6: memref<128x128xf32, #tpu.memory_space<vmem>>, %arg7: memref<1x16x16xf32, #tpu.memory_space<vmem>>, %arg8: memref<1x16x128xf32, #tpu.memory_space<vmem>>) attributes {dimension_semantics = [#tpu.dimension_semantics<parallel>, #tpu.dimension_semantics<parallel>], iteration_bounds = array<i64: 2, 1>, scalar_prefetch = 0 : i64, scratch_operands = 0 : i64, tpu.core_type = #tpu.core_type<tc>, window_params = [{transform_indices = @transform_0, window_bounds = array<i64: 1, 16, 128>}, {transform_indices = @transform_1, window_bounds = array<i64: 1, 16, 128>}, {pipeline_mode = #tpu.pipeline_mode<synchronous>, transform_indices = @transform_2, window_bounds = array<i64: 128, 128>}, {pipeline_mode = #tpu.pipeline_mode<synchronous>, transform_indices = @transform_3, window_bounds = array<i64: 128, 128>}, {pipeline_mode = #tpu.pipeline_mode<synchronous>, transform_indices = @transform_4, window_bounds = array<i64: 128, 128>}, {transform_indices = @transform_5, window_bounds = array<i64: 1, 16, 16>}, {transform_indices = @transform_6, window_bounds = array<i64: 1, 16, 128>}]} {
    %c0 = arith.constant 0 : index
    %c0_0 = arith.constant 0 : index
    %c0_1 = arith.constant 0 : index
    %0 = vector.load %arg2[%c0, %c0_0, %c0_1] : memref<1x16x128xf32, #tpu.memory_space<vmem>>, vector<1x16x128xf32>
    %1 = vector.shape_cast %0 : vector<1x16x128xf32> to vector<16x128xf32>
    %c0_2 = arith.constant 0 : index
    %c0_3 = arith.constant 0 : index
    %c0_4 = arith.constant 0 : index
    %2 = vector.load %arg3[%c0_2, %c0_3, %c0_4] : memref<1x16x128xf32, #tpu.memory_space<vmem>>, vector<1x16x128xf32>
    %3 = vector.shape_cast %2 : vector<1x16x128xf32> to vector<16x128xf32>
    %c0_5 = arith.constant 0 : index
    %c0_6 = arith.constant 0 : index
    %c0_7 = arith.constant 0 : index
    %4 = vector.load %arg7[%c0_5, %c0_6, %c0_7] : memref<1x16x16xf32, #tpu.memory_space<vmem>>, vector<1x16x16xf32>
    %5 = vector.shape_cast %4 : vector<1x16x16xf32> to vector<16x16xf32>
    %c0_8 = arith.constant 0 : index
    %c0_9 = arith.constant 0 : index
    %6 = vector.load %arg4[%c0_8, %c0_9] : memref<128x128xf32, #tpu.memory_space<vmem>>, vector<128x128xf32>
    %cst = arith.constant dense<0.000000e+00> : vector<16x128xf32>
    %7 = tpu.matmul %1, %6, %cst {dimension_numbers = #tpu.dot_dimension_numbers<[1], [0], [0], [1], [0, 0, 1, 1], [], []>} : vector<16x128xf32>, vector<128x128xf32>, vector<16x128xf32> -> vector<16x128xf32>
    %c0_10 = arith.constant 0 : index
    %c0_11 = arith.constant 0 : index
    %8 = vector.load %arg5[%c0_10, %c0_11] : memref<128x128xf32, #tpu.memory_space<vmem>>, vector<128x128xf32>
    %cst_12 = arith.constant dense<0.000000e+00> : vector<16x128xf32>
    %9 = tpu.matmul %3, %8, %cst_12 {dimension_numbers = #tpu.dot_dimension_numbers<[1], [0], [0], [1], [0, 0, 1, 1], [], []>} : vector<16x128xf32>, vector<128x128xf32>, vector<16x128xf32> -> vector<16x128xf32>
    %c0_13 = arith.constant 0 : index
    %c0_14 = arith.constant 0 : index
    %10 = vector.load %arg6[%c0_13, %c0_14] : memref<128x128xf32, #tpu.memory_space<vmem>>, vector<128x128xf32>
    %cst_15 = arith.constant dense<0.000000e+00> : vector<16x128xf32>
    %11 = tpu.matmul %3, %10, %cst_15 {dimension_numbers = #tpu.dot_dimension_numbers<[1], [0], [0], [1], [0, 0, 1, 1], [], []>} : vector<16x128xf32>, vector<128x128xf32>, vector<16x128xf32> -> vector<16x128xf32>
    %12 = vector.extract_strided_slice %7 {offsets = [0, 0], sizes = [16, 16], strides = [1, 1]} : vector<16x128xf32> to vector<16x16xf32>
    %13 = vector.extract_strided_slice %9 {offsets = [0, 0], sizes = [16, 16], strides = [1, 1]} : vector<16x128xf32> to vector<16x16xf32>
    %14 = vector.extract_strided_slice %11 {offsets = [0, 0], sizes = [16, 16], strides = [1, 1]} : vector<16x128xf32> to vector<16x16xf32>
    %cst_16 = arith.constant dense<0.000000e+00> : vector<16x16xf32>
    %15 = tpu.matmul %12, %13, %cst_16 {dimension_numbers = #tpu.dot_dimension_numbers<[1], [1], [0], [0], [0, 0, 1, 0], [], []>} : vector<16x16xf32>, vector<16x16xf32>, vector<16x16xf32> -> vector<16x16xf32>
    %cst_17 = arith.constant 2.500000e-01 : f32
    %16 = vector.broadcast %cst_17 : f32 to vector<16x16xf32>
    %17 = arith.mulf %15, %16 : vector<16x16xf32>
    %18 = arith.addf %17, %5 : vector<16x16xf32>
    %cst_18 = arith.constant dense<0xFF800000> : vector<16xf32>
    %19 = vector.multi_reduction <maximumf>, %18, %cst_18 [1] : vector<16x16xf32> to vector<16xf32>
    %20 = vector.shape_cast %19 : vector<16xf32> to vector<16x1xf32>
    %21 = vector.broadcast %20 : vector<16x1xf32> to vector<16x16xf32>
    %22 = arith.subf %18, %21 : vector<16x16xf32>
    %23 = math.exp %22 : vector<16x16xf32>
    %cst_19 = arith.constant dense<0.000000e+00> : vector<16xf32>
    %24 = vector.multi_reduction <add>, %23, %cst_19 [1] : vector<16x16xf32> to vector<16xf32>
    %25 = vector.shape_cast %24 : vector<16xf32> to vector<16x1xf32>
    %26 = tpu.reciprocal %25 : vector<16x1xf32> -> vector<16x1xf32>
    %27 = vector.broadcast %26 : vector<16x1xf32> to vector<16x16xf32>
    %28 = arith.mulf %23, %27 : vector<16x16xf32>
    %cst_20 = arith.constant dense<0.000000e+00> : vector<16x16xf32>
    %29 = tpu.matmul %28, %14, %cst_20 {dimension_numbers = #tpu.dot_dimension_numbers<[1], [0], [0], [1], [0, 0, 1, 1], [], []>} : vector<16x16xf32>, vector<16x16xf32>, vector<16x16xf32> -> vector<16x16xf32>
    %30 = vector.extract_strided_slice %7 {offsets = [0, 16], sizes = [16, 16], strides = [1, 1]} : vector<16x128xf32> to vector<16x16xf32>
    %31 = vector.extract_strided_slice %9 {offsets = [0, 16], sizes = [16, 16], strides = [1, 1]} : vector<16x128xf32> to vector<16x16xf32>
    %32 = vector.extract_strided_slice %11 {offsets = [0, 16], sizes = [16, 16], strides = [1, 1]} : vector<16x128xf32> to vector<16x16xf32>
    %cst_21 = arith.constant dense<0.000000e+00> : vector<16x16xf32>
    %33 = tpu.matmul %30, %31, %cst_21 {dimension_numbers = #tpu.dot_dimension_numbers<[1], [1], [0], [0], [0, 0, 1, 0], [], []>} : vector<16x16xf32>, vector<16x16xf32>, vector<16x16xf32> -> vector<16x16xf32>
    %cst_22 = arith.constant 2.500000e-01 : f32
    %34 = vector.broadcast %cst_22 : f32 to vector<16x16xf32>
    %35 = arith.mulf %33, %34 : vector<16x16xf32>
    %36 = arith.addf %35, %5 : vector<16x16xf32>
    %cst_23 = arith.constant dense<0xFF800000> : vector<16xf32>
    %37 = vector.multi_reduction <maximumf>, %36, %cst_23 [1] : vector<16x16xf32> to vector<16xf32>
    %38 = vector.shape_cast %37 : vector<16xf32> to vector<16x1xf32>
    %39 = vector.broadcast %38 : vector<16x1xf32> to vector<16x16xf32>
    %40 = arith.subf %36, %39 : vector<16x16xf32>
    %41 = math.exp %40 : vector<16x16xf32>
    %cst_24 = arith.constant dense<0.000000e+00> : vector<16xf32>
    %42 = vector.multi_reduction <add>, %41, %cst_24 [1] : vector<16x16xf32> to vector<16xf32>
    %43 = vector.shape_cast %42 : vector<16xf32> to vector<16x1xf32>
    %44 = tpu.reciprocal %43 : vector<16x1xf32> -> vector<16x1xf32>
    %45 = vector.broadcast %44 : vector<16x1xf32> to vector<16x16xf32>
    %46 = arith.mulf %41, %45 : vector<16x16xf32>
    %cst_25 = arith.constant dense<0.000000e+00> : vector<16x16xf32>
    %47 = tpu.matmul %46, %32, %cst_25 {dimension_numbers = #tpu.dot_dimension_numbers<[1], [0], [0], [1], [0, 0, 1, 1], [], []>} : vector<16x16xf32>, vector<16x16xf32>, vector<16x16xf32> -> vector<16x16xf32>
    %48 = vector.extract_strided_slice %7 {offsets = [0, 32], sizes = [16, 16], strides = [1, 1]} : vector<16x128xf32> to vector<16x16xf32>
    %49 = vector.extract_strided_slice %9 {offsets = [0, 32], sizes = [16, 16], strides = [1, 1]} : vector<16x128xf32> to vector<16x16xf32>
    %50 = vector.extract_strided_slice %11 {offsets = [0, 32], sizes = [16, 16], strides = [1, 1]} : vector<16x128xf32> to vector<16x16xf32>
    %cst_26 = arith.constant dense<0.000000e+00> : vector<16x16xf32>
    %51 = tpu.matmul %48, %49, %cst_26 {dimension_numbers = #tpu.dot_dimension_numbers<[1], [1], [0], [0], [0, 0, 1, 0], [], []>} : vector<16x16xf32>, vector<16x16xf32>, vector<16x16xf32> -> vector<16x16xf32>
    %cst_27 = arith.constant 2.500000e-01 : f32
    %52 = vector.broadcast %cst_27 : f32 to vector<16x16xf32>
    %53 = arith.mulf %51, %52 : vector<16x16xf32>
    %54 = arith.addf %53, %5 : vector<16x16xf32>
    %cst_28 = arith.constant dense<0xFF800000> : vector<16xf32>
    %55 = vector.multi_reduction <maximumf>, %54, %cst_28 [1] : vector<16x16xf32> to vector<16xf32>
    %56 = vector.shape_cast %55 : vector<16xf32> to vector<16x1xf32>
    %57 = vector.broadcast %56 : vector<16x1xf32> to vector<16x16xf32>
    %58 = arith.subf %54, %57 : vector<16x16xf32>
    %59 = math.exp %58 : vector<16x16xf32>
    %cst_29 = arith.constant dense<0.000000e+00> : vector<16xf32>
    %60 = vector.multi_reduction <add>, %59, %cst_29 [1] : vector<16x16xf32> to vector<16xf32>
    %61 = vector.shape_cast %60 : vector<16xf32> to vector<16x1xf32>
    %62 = tpu.reciprocal %61 : vector<16x1xf32> -> vector<16x1xf32>
    %63 = vector.broadcast %62 : vector<16x1xf32> to vector<16x16xf32>
    %64 = arith.mulf %59, %63 : vector<16x16xf32>
    %cst_30 = arith.constant dense<0.000000e+00> : vector<16x16xf32>
    %65 = tpu.matmul %64, %50, %cst_30 {dimension_numbers = #tpu.dot_dimension_numbers<[1], [0], [0], [1], [0, 0, 1, 1], [], []>} : vector<16x16xf32>, vector<16x16xf32>, vector<16x16xf32> -> vector<16x16xf32>
    %66 = vector.extract_strided_slice %7 {offsets = [0, 48], sizes = [16, 16], strides = [1, 1]} : vector<16x128xf32> to vector<16x16xf32>
    %67 = vector.extract_strided_slice %9 {offsets = [0, 48], sizes = [16, 16], strides = [1, 1]} : vector<16x128xf32> to vector<16x16xf32>
    %68 = vector.extract_strided_slice %11 {offsets = [0, 48], sizes = [16, 16], strides = [1, 1]} : vector<16x128xf32> to vector<16x16xf32>
    %cst_31 = arith.constant dense<0.000000e+00> : vector<16x16xf32>
    %69 = tpu.matmul %66, %67, %cst_31 {dimension_numbers = #tpu.dot_dimension_numbers<[1], [1], [0], [0], [0, 0, 1, 0], [], []>} : vector<16x16xf32>, vector<16x16xf32>, vector<16x16xf32> -> vector<16x16xf32>
    %cst_32 = arith.constant 2.500000e-01 : f32
    %70 = vector.broadcast %cst_32 : f32 to vector<16x16xf32>
    %71 = arith.mulf %69, %70 : vector<16x16xf32>
    %72 = arith.addf %71, %5 : vector<16x16xf32>
    %cst_33 = arith.constant dense<0xFF800000> : vector<16xf32>
    %73 = vector.multi_reduction <maximumf>, %72, %cst_33 [1] : vector<16x16xf32> to vector<16xf32>
    %74 = vector.shape_cast %73 : vector<16xf32> to vector<16x1xf32>
    %75 = vector.broadcast %74 : vector<16x1xf32> to vector<16x16xf32>
    %76 = arith.subf %72, %75 : vector<16x16xf32>
    %77 = math.exp %76 : vector<16x16xf32>
    %cst_34 = arith.constant dense<0.000000e+00> : vector<16xf32>
    %78 = vector.multi_reduction <add>, %77, %cst_34 [1] : vector<16x16xf32> to vector<16xf32>
    %79 = vector.shape_cast %78 : vector<16xf32> to vector<16x1xf32>
    %80 = tpu.reciprocal %79 : vector<16x1xf32> -> vector<16x1xf32>
    %81 = vector.broadcast %80 : vector<16x1xf32> to vector<16x16xf32>
    %82 = arith.mulf %77, %81 : vector<16x16xf32>
    %cst_35 = arith.constant dense<0.000000e+00> : vector<16x16xf32>
    %83 = tpu.matmul %82, %68, %cst_35 {dimension_numbers = #tpu.dot_dimension_numbers<[1], [0], [0], [1], [0, 0, 1, 1], [], []>} : vector<16x16xf32>, vector<16x16xf32>, vector<16x16xf32> -> vector<16x16xf32>
    %84 = vector.extract_strided_slice %7 {offsets = [0, 64], sizes = [16, 16], strides = [1, 1]} : vector<16x128xf32> to vector<16x16xf32>
    %85 = vector.extract_strided_slice %9 {offsets = [0, 64], sizes = [16, 16], strides = [1, 1]} : vector<16x128xf32> to vector<16x16xf32>
    %86 = vector.extract_strided_slice %11 {offsets = [0, 64], sizes = [16, 16], strides = [1, 1]} : vector<16x128xf32> to vector<16x16xf32>
    %cst_36 = arith.constant dense<0.000000e+00> : vector<16x16xf32>
    %87 = tpu.matmul %84, %85, %cst_36 {dimension_numbers = #tpu.dot_dimension_numbers<[1], [1], [0], [0], [0, 0, 1, 0], [], []>} : vector<16x16xf32>, vector<16x16xf32>, vector<16x16xf32> -> vector<16x16xf32>
    %cst_37 = arith.constant 2.500000e-01 : f32
    %88 = vector.broadcast %cst_37 : f32 to vector<16x16xf32>
    %89 = arith.mulf %87, %88 : vector<16x16xf32>
    %90 = arith.addf %89, %5 : vector<16x16xf32>
    %cst_38 = arith.constant dense<0xFF800000> : vector<16xf32>
    %91 = vector.multi_reduction <maximumf>, %90, %cst_38 [1] : vector<16x16xf32> to vector<16xf32>
    %92 = vector.shape_cast %91 : vector<16xf32> to vector<16x1xf32>
    %93 = vector.broadcast %92 : vector<16x1xf32> to vector<16x16xf32>
    %94 = arith.subf %90, %93 : vector<16x16xf32>
    %95 = math.exp %94 : vector<16x16xf32>
    %cst_39 = arith.constant dense<0.000000e+00> : vector<16xf32>
    %96 = vector.multi_reduction <add>, %95, %cst_39 [1] : vector<16x16xf32> to vector<16xf32>
    %97 = vector.shape_cast %96 : vector<16xf32> to vector<16x1xf32>
    %98 = tpu.reciprocal %97 : vector<16x1xf32> -> vector<16x1xf32>
    %99 = vector.broadcast %98 : vector<16x1xf32> to vector<16x16xf32>
    %100 = arith.mulf %95, %99 : vector<16x16xf32>
    %cst_40 = arith.constant dense<0.000000e+00> : vector<16x16xf32>
    %101 = tpu.matmul %100, %86, %cst_40 {dimension_numbers = #tpu.dot_dimension_numbers<[1], [0], [0], [1], [0, 0, 1, 1], [], []>} : vector<16x16xf32>, vector<16x16xf32>, vector<16x16xf32> -> vector<16x16xf32>
    %102 = vector.extract_strided_slice %7 {offsets = [0, 80], sizes = [16, 16], strides = [1, 1]} : vector<16x128xf32> to vector<16x16xf32>
    %103 = vector.extract_strided_slice %9 {offsets = [0, 80], sizes = [16, 16], strides = [1, 1]} : vector<16x128xf32> to vector<16x16xf32>
    %104 = vector.extract_strided_slice %11 {offsets = [0, 80], sizes = [16, 16], strides = [1, 1]} : vector<16x128xf32> to vector<16x16xf32>
    %cst_41 = arith.constant dense<0.000000e+00> : vector<16x16xf32>
    %105 = tpu.matmul %102, %103, %cst_41 {dimension_numbers = #tpu.dot_dimension_numbers<[1], [1], [0], [0], [0, 0, 1, 0], [], []>} : vector<16x16xf32>, vector<16x16xf32>, vector<16x16xf32> -> vector<16x16xf32>
    %cst_42 = arith.constant 2.500000e-01 : f32
    %106 = vector.broadcast %cst_42 : f32 to vector<16x16xf32>
    %107 = arith.mulf %105, %106 : vector<16x16xf32>
    %108 = arith.addf %107, %5 : vector<16x16xf32>
    %cst_43 = arith.constant dense<0xFF800000> : vector<16xf32>
    %109 = vector.multi_reduction <maximumf>, %108, %cst_43 [1] : vector<16x16xf32> to vector<16xf32>
    %110 = vector.shape_cast %109 : vector<16xf32> to vector<16x1xf32>
    %111 = vector.broadcast %110 : vector<16x1xf32> to vector<16x16xf32>
    %112 = arith.subf %108, %111 : vector<16x16xf32>
    %113 = math.exp %112 : vector<16x16xf32>
    %cst_44 = arith.constant dense<0.000000e+00> : vector<16xf32>
    %114 = vector.multi_reduction <add>, %113, %cst_44 [1] : vector<16x16xf32> to vector<16xf32>
    %115 = vector.shape_cast %114 : vector<16xf32> to vector<16x1xf32>
    %116 = tpu.reciprocal %115 : vector<16x1xf32> -> vector<16x1xf32>
    %117 = vector.broadcast %116 : vector<16x1xf32> to vector<16x16xf32>
    %118 = arith.mulf %113, %117 : vector<16x16xf32>
    %cst_45 = arith.constant dense<0.000000e+00> : vector<16x16xf32>
    %119 = tpu.matmul %118, %104, %cst_45 {dimension_numbers = #tpu.dot_dimension_numbers<[1], [0], [0], [1], [0, 0, 1, 1], [], []>} : vector<16x16xf32>, vector<16x16xf32>, vector<16x16xf32> -> vector<16x16xf32>
    %120 = vector.extract_strided_slice %7 {offsets = [0, 96], sizes = [16, 16], strides = [1, 1]} : vector<16x128xf32> to vector<16x16xf32>
    %121 = vector.extract_strided_slice %9 {offsets = [0, 96], sizes = [16, 16], strides = [1, 1]} : vector<16x128xf32> to vector<16x16xf32>
    %122 = vector.extract_strided_slice %11 {offsets = [0, 96], sizes = [16, 16], strides = [1, 1]} : vector<16x128xf32> to vector<16x16xf32>
    %cst_46 = arith.constant dense<0.000000e+00> : vector<16x16xf32>
    %123 = tpu.matmul %120, %121, %cst_46 {dimension_numbers = #tpu.dot_dimension_numbers<[1], [1], [0], [0], [0, 0, 1, 0], [], []>} : vector<16x16xf32>, vector<16x16xf32>, vector<16x16xf32> -> vector<16x16xf32>
    %cst_47 = arith.constant 2.500000e-01 : f32
    %124 = vector.broadcast %cst_47 : f32 to vector<16x16xf32>
    %125 = arith.mulf %123, %124 : vector<16x16xf32>
    %126 = arith.addf %125, %5 : vector<16x16xf32>
    %cst_48 = arith.constant dense<0xFF800000> : vector<16xf32>
    %127 = vector.multi_reduction <maximumf>, %126, %cst_48 [1] : vector<16x16xf32> to vector<16xf32>
    %128 = vector.shape_cast %127 : vector<16xf32> to vector<16x1xf32>
    %129 = vector.broadcast %128 : vector<16x1xf32> to vector<16x16xf32>
    %130 = arith.subf %126, %129 : vector<16x16xf32>
    %131 = math.exp %130 : vector<16x16xf32>
    %cst_49 = arith.constant dense<0.000000e+00> : vector<16xf32>
    %132 = vector.multi_reduction <add>, %131, %cst_49 [1] : vector<16x16xf32> to vector<16xf32>
    %133 = vector.shape_cast %132 : vector<16xf32> to vector<16x1xf32>
    %134 = tpu.reciprocal %133 : vector<16x1xf32> -> vector<16x1xf32>
    %135 = vector.broadcast %134 : vector<16x1xf32> to vector<16x16xf32>
    %136 = arith.mulf %131, %135 : vector<16x16xf32>
    %cst_50 = arith.constant dense<0.000000e+00> : vector<16x16xf32>
    %137 = tpu.matmul %136, %122, %cst_50 {dimension_numbers = #tpu.dot_dimension_numbers<[1], [0], [0], [1], [0, 0, 1, 1], [], []>} : vector<16x16xf32>, vector<16x16xf32>, vector<16x16xf32> -> vector<16x16xf32>
    %138 = vector.extract_strided_slice %7 {offsets = [0, 112], sizes = [16, 16], strides = [1, 1]} : vector<16x128xf32> to vector<16x16xf32>
    %139 = vector.extract_strided_slice %9 {offsets = [0, 112], sizes = [16, 16], strides = [1, 1]} : vector<16x128xf32> to vector<16x16xf32>
    %140 = vector.extract_strided_slice %11 {offsets = [0, 112], sizes = [16, 16], strides = [1, 1]} : vector<16x128xf32> to vector<16x16xf32>
    %cst_51 = arith.constant dense<0.000000e+00> : vector<16x16xf32>
    %141 = tpu.matmul %138, %139, %cst_51 {dimension_numbers = #tpu.dot_dimension_numbers<[1], [1], [0], [0], [0, 0, 1, 0], [], []>} : vector<16x16xf32>, vector<16x16xf32>, vector<16x16xf32> -> vector<16x16xf32>
    %cst_52 = arith.constant 2.500000e-01 : f32
    %142 = vector.broadcast %cst_52 : f32 to vector<16x16xf32>
    %143 = arith.mulf %141, %142 : vector<16x16xf32>
    %144 = arith.addf %143, %5 : vector<16x16xf32>
    %cst_53 = arith.constant dense<0xFF800000> : vector<16xf32>
    %145 = vector.multi_reduction <maximumf>, %144, %cst_53 [1] : vector<16x16xf32> to vector<16xf32>
    %146 = vector.shape_cast %145 : vector<16xf32> to vector<16x1xf32>
    %147 = vector.broadcast %146 : vector<16x1xf32> to vector<16x16xf32>
    %148 = arith.subf %144, %147 : vector<16x16xf32>
    %149 = math.exp %148 : vector<16x16xf32>
    %cst_54 = arith.constant dense<0.000000e+00> : vector<16xf32>
    %150 = vector.multi_reduction <add>, %149, %cst_54 [1] : vector<16x16xf32> to vector<16xf32>
    %151 = vector.shape_cast %150 : vector<16xf32> to vector<16x1xf32>
    %152 = tpu.reciprocal %151 : vector<16x1xf32> -> vector<16x1xf32>
    %153 = vector.broadcast %152 : vector<16x1xf32> to vector<16x16xf32>
    %154 = arith.mulf %149, %153 : vector<16x16xf32>
    %cst_55 = arith.constant dense<0.000000e+00> : vector<16x16xf32>
    %155 = tpu.matmul %154, %140, %cst_55 {dimension_numbers = #tpu.dot_dimension_numbers<[1], [0], [0], [1], [0, 0, 1, 1], [], []>} : vector<16x16xf32>, vector<16x16xf32>, vector<16x16xf32> -> vector<16x16xf32>
    %156 = tpu.concatenate %29, %47, %65, %83, %101, %119, %137, %155 in 1 : vector<16x16xf32>, vector<16x16xf32>, vector<16x16xf32>, vector<16x16xf32>, vector<16x16xf32>, vector<16x16xf32>, vector<16x16xf32>, vector<16x16xf32> -> vector<16x128xf32>
    %c0_56 = arith.constant 0 : index
    %c0_57 = arith.constant 0 : index
    %c0_58 = arith.constant 0 : index
    %157 = vector.load %arg8[%c0_56, %c0_57, %c0_58] : memref<1x16x128xf32, #tpu.memory_space<vmem>>, vector<1x16x128xf32>
    %158 = vector.shape_cast %157 : vector<1x16x128xf32> to vector<16x128xf32>
    %159 = vector.shape_cast %156 : vector<16x128xf32> to vector<1x16x128xf32>
    tpu.vector_store %arg8[%c0_56, %c0_57, %c0_58], %159 {strides = array<i32>} : memref<1x16x128xf32, #tpu.memory_space<vmem>>, vector<1x16x128xf32>,
    return
  }
  func.func @transform_0(%arg0: i32, %arg1: i32) -> (i32, i32, i32) {
    %c0_i32 = arith.constant 0 : i32
    %c0_i32_0 = arith.constant 0 : i32
    return %arg0, %arg1, %c0_i32 : i32, i32, i32
  }
  func.func @transform_1(%arg0: i32, %arg1: i32) -> (i32, i32, i32) {
    %c0_i32 = arith.constant 0 : i32
    %c0_i32_0 = arith.constant 0 : i32
    %c0_i32_1 = arith.constant 0 : i32
    return %arg0, %c0_i32, %c0_i32_0 : i32, i32, i32
  }
  func.func @transform_2(%arg0: i32, %arg1: i32) -> (i32, i32) {
    %c0_i32 = arith.constant 0 : i32
    %c0_i32_0 = arith.constant 0 : i32
    %c0_i32_1 = arith.constant 0 : i32
    return %c0_i32, %c0_i32_0 : i32, i32
  }
  func.func @transform_3(%arg0: i32, %arg1: i32) -> (i32, i32) {
    %c0_i32 = arith.constant 0 : i32
    %c0_i32_0 = arith.constant 0 : i32
    %c0_i32_1 = arith.constant 0 : i32
    return %c0_i32, %c0_i32_0 : i32, i32
  }
  func.func @transform_4(%arg0: i32, %arg1: i32) -> (i32, i32) {
    %c0_i32 = arith.constant 0 : i32
    %c0_i32_0 = arith.constant 0 : i32
    %c0_i32_1 = arith.constant 0 : i32
    return %c0_i32, %c0_i32_0 : i32, i32
  }
  func.func @transform_5(%arg0: i32, %arg1: i32) -> (i32, i32, i32) {
    %c0_i32 = arith.constant 0 : i32
    %c0_i32_0 = arith.constant 0 : i32
    return %arg0, %arg1, %c0_i32 : i32, i32, i32
  }
  func.func @transform_6(%arg0: i32, %arg1: i32) -> (i32, i32, i32) {
    %c0_i32 = arith.constant 0 : i32
    %c0_i32_0 = arith.constant 0 : i32
    return %arg0, %arg1, %c0_i32 : i32, i32, i32
  }
}

</mosaic_0001>

<bundles_post_ra>
// kernel: tpu_custom_call.1
= control target key start
LH: loop header
LB: loop body
LE: loop exit
PB: predicated region body
PF: predicated region fallthrough
CT: control target
= control target key end

     0   :  { %s3070_s0 = inlined_call_operand.hbm [shape: f32[2,16,128], index: 0, kind: input, shape index: {}]   ;;  %s3071_s1 = inlined_call_operand.hbm [shape: f32[2,16,128], index: 1, kind: input, shape index: {}]   ;;  %s3072_s2 = inlined_call_operand.hbm [shape: f32[128,128], index: 2, kind: input, shape index: {}]   ;;  %s3073_s3 = inlined_call_operand.hbm [shape: f32[128,128], index: 3, kind: input, shape index: {}]   ;;  %s3074_s4 = inlined_call_operand.hbm [shape: f32[128,128], index: 4, kind: input, shape index: {}]   ;;  %s3075_s5 = inlined_call_operand.hbm [shape: f32[2,16,16], index: 5, kind: input, shape index: {}]   ;;  %s3076_s6 = inlined_call_operand.hbm [shape: f32[2,16,128], index: 6, kind: output, shape index: {}]  }
   0x1   :  { %3084 = sst [smem:[#allocation24_spill]] %s3070_s0 }
   0x2   :  { %3085 = sst [smem:[#allocation25_spill]] %s3072_s2 }
   0x3   :  { %3086 = sst [smem:[#allocation26_spill]] %s3073_s3 }
   0x4   :  { %3087 = sst [smem:[#allocation27_spill]] %s3074_s4 }
   0x5   :  { %11 = vsyncpa [#allocation3], 0 }
   0x6   :  { %13 = vsyncpa [#allocation3 + $0x1], 0 }
   0x7   :  { %14 = vsyncpa [#allocation6], 0 }
   0x8   :  { %16 = vsyncpa [#allocation6 + $0x1], 0 }
   0x9   :  { %17 = vsyncpa [#allocation9], 0 }
   0xa   :  { %18 = vsyncpa [#allocation12], 0 }
   0xb   :  { %20 = vsyncpa [#allocation12 + $0x1], 0 }
   0xc   :  { %21 = vsyncpa [#allocation4], 0 }
   0xd   :  { %23 = vsyncpa [#allocation4 + $0x1], 0  ;;  %s2439_s21 = smov 0   ;;  %s2441_s22 = smov 0  }
   0xe   :  { %s2443_s23 = smov 0   ;;  %s2445_s24 = smov 0  }
   0xf   :  { %s2447_s25 = smov 0   ;;  %s2449_s26 = smov 0  }
  0x10 LB: > { %3088 = sst [smem:[#allocation20_spill]] %s2376_s23  ;;  %s2470_s27 = sadd.s32 4294967295, %s2388_s26   ;;  %s2388_s26 = sphi %s2449_s26, %s29_s26   ;;  %s2384_s25 = sphi %s2447_s25, %s3110_s25   ;;  %s2380_s24 = sphi %s2445_s24, %s3109_s24   ;;  %s2376_s23 = sphi %s2443_s23, %s3108_s23   ;;  %s2372_s22 = sphi %s2441_s22, %s3112_s22   ;;  %s2368_s21 = sphi %s2439_s21, %s3111_s21  }
  0x11   : > { %3089 = sst [smem:[#allocation21_spill]] %s2384_s25  ;;  %s1815_s28 = sadd.s32 4294967294, %s2388_s26  }
  0x12   : > { %p63_p0 = scmp.ne.s32.totalorder %s2372_s22, %s2368_s21  ;;  %p64_p1 = scmp.eq.s32.totalorder %s2470_s27, 0 }
  0x13   : > { %p206_p2 = scmp.eq.s32.totalorder %s2470_s27, 1  ;;  %p212_p3 = scmp.eq.s32.totalorder %s1815_s28, 1 }
  0x14   : > { %p2479_p4 = por %p64_p1, %p63_p0  ;;  %p1816_p5 = scmp.ge.s32.totalorder %s2388_s26, 1 }
  0x15   : > { %p2484_p6 = por %p212_p3, %p63_p0  ;;  %p219_p7 = scmp.lt.s32.totalorder %s2388_s26, 3 }
  0x16   : > { %s3092_s2 = sld [smem:[#allocation25_spill]]  ;;  %s2390_s11 = smov [#allocation7]  }
  0x17   : > { %p2492_p8 = pnand %p1816_p5, %p219_p7  ;;  %s232_s12 = sshll.u32 %s2390_s11, 4  ;;  %s233_s12 = int_to_ptr.vmem [resolvable:$true] %s232_s12 }
  0x18   : > { %p1820_p11 = scmp.ge.s32.totalorder %s2388_s26, 2  ;;  %s3095_s3 = sld [smem:[#allocation26_spill]] }
  0x19   : > { %p1917_p9 = pneg %p2492_p8  ;;  %s3077_s17 = smov 128  }
  0x1a   : > { %s3079_s18 = smov 8   ;;  %s2393_s19 = smov [#allocation8]  }
  0x1b   : > { %p2500_p10 = pnand %p1917_p9, %p64_p1  ;;  %s246_s20 = sshll.u32 %s2393_s19, 4  ;;  %s247_s20 = int_to_ptr.vmem [resolvable:$true] %s246_s20 }
  0x1c   : > { %s230_s9 = sshll.u32 %s3092_s2, 4  ;;  %s3096_s4 = sld [smem:[#allocation27_spill]]  ;;  %s231_s9 = int_to_ptr.hbm [resolvable:$true] %s230_s9 }
  0x1d   : > { %1920 = dma.hbm_to_vmem [thread:$0]  (!%p2500_p10), %s231_s9, 2048, %s233_s12, [#allocation6], %s3077_s17, %s3077_s17, %s3079_s18  }
  0x1e   : > { %s244_s16 = sshll.u32 %s3095_s3, 4  ;;  %s2394_s11 = smov [#allocation10]   ;;  %s245_s16 = int_to_ptr.hbm [resolvable:$true] %s244_s16 }
  0x1f   : > { %1923 = dma.hbm_to_vmem [thread:$0]  (!%p2500_p10), %s245_s16, 2048, %s247_s20, [#allocation9], %s3077_s17, %s3077_s17, %s3079_s18  }
  0x20   : > { %s260_s14 = sshll.u32 %s2394_s11, 4  ;;  %s41_s9 = sadd.s32 1, %s2384_s25  ;;  %s261_s14 = int_to_ptr.vmem [resolvable:$true] %s260_s14 }
  0x21   : > { %p43_p12 = scmp.ge.s32.totalorder %s41_s9, 2  ;;  %s50_s12 = sadd.s32 1, %s2376_s23 }
  0x22   : > { %s258_s8 = sshll.u32 %s3096_s4, 4  ;;  %p57_p13 = scmp.ne.s32.totalorder %s2376_s23, %s2372_s22  ;;  %s259_s8 = int_to_ptr.hbm [resolvable:$true] %s258_s8 }
  0x23   : > { %1926 = dma.hbm_to_vmem [thread:$0]  (!%p2500_p10), %s259_s8, 2048, %s261_s14, [#allocation9], %s3077_s17, %s3077_s17, %s3079_s18  }
  0x24   : > { %p58_p0 = scmp.eq.s32.totalorder %s2388_s26, 0  ;;  %s3114_s9 = smov (%p43_p12, %s41_s9), 0 }
  0x25   : > { %3097 = sst [smem:[#allocation22_spill]] %s3114_s9  ;;  %p2539_p5 = por %p206_p2, %p57_p13 }
  0x26   : > { %p2533_p3 = por %p58_p0, %p57_p13  ;;  %s45_s16 = ssub.s32 %s2384_s25, %s3114_s9 }
  0x27   : > { %p1944_p7 = scmp.lt.s32.totalorder %s2388_s26, 2  ;;  %p48_p9 = scmp.eq.s32.totalorder %s45_s16, 0 }
  0x28   : > { %s2547_s19 = sand.u32 1, %s2376_s23   ;;  %s1891_s7 = sshll.u32 %s2384_s25, 4 }
  0x29   : > { %s1821_s20 = sshll.u32 %s2547_s19, 4  ;;  %s3101_s0 = sld [smem:[#allocation24_spill]] }
  0x2a   : > { %s2551_s28 = scalar_select %p48_p9, %s2376_s23, %s50_s12  }
  0x2b   : > { %s278_s17 = scalar_lea.vmem [#allocation2], %s1821_s20  ;;  %p2559_p2 = pnand %p1944_p7, %p2533_p3 }
  0x2c   : > { %3100 = sst [smem:[#allocation23_spill]] %s2551_s28  ;;  %s288_s18 = sshll.u32 %s278_s17, 4  ;;  %s289_s18 = int_to_ptr.vmem [resolvable:$true] %s288_s18 }
  0x2d   : > { %s298_s3 = sand.u32 1, %s2388_s26   ;;  %s275_s12 = scalar_lea.sflag [#allocation3], %s2547_s19 }
  0x2e   : > { %s3103_s4 = smov 8   ;;  %s3104_s9 = smov 128  }
  0x2f   : > { %s285_s14 = scalar_lea.hbm %s3101_s0, %s1891_s7  ;;  %s307_s11 = scalar_lea.hbm %s3071_s1, %s1891_s7 }
  0x30   : > { %s286_s2 = sshll.u32 %s285_s14, 4  ;;  %s302_s15 = scalar_lea.vmem [#allocation5], %s1821_s20  ;;  %s287_s2 = int_to_ptr.hbm [resolvable:$true] %s286_s2 }
  0x31   : > { %1930 = dma.hbm_to_vmem [thread:$0]  (!%p2559_p2), %s287_s2, 256, %s289_s18, %s275_s12, %s3104_s9, %s3104_s9, %s3103_s4  }
  0x32   : > { %s310_s14 = sshll.u32 %s302_s15, 4  ;;  %s308_s0 = sshll.u32 %s307_s11, 4  ;;  %s311_s14 = int_to_ptr.vmem [resolvable:$true] %s310_s14  ;;  %s309_s0 = int_to_ptr.hbm [resolvable:$true] %s308_s0 }
  0x33   : > { %s299_s25 = scalar_lea.sflag [#allocation6], %s298_s3  ;;  %s331_s2 = scalar_lea.hbm %s3075_s5, %s1891_s7 }
  0x34   : > { %1933 = dma.hbm_to_vmem [thread:$0]  (!%p2559_p2), %s309_s0, 256, %s311_s14, %s299_s25, %s3104_s9, %s3104_s9, %s3103_s4  }
  0x35   : > { %s332_s18 = sshll.u32 %s331_s2, 4  ;;  %s324_s12 = scalar_lea.vmem [#allocation11], %s1821_s20  ;;  %s333_s18 = int_to_ptr.hbm [resolvable:$true] %s332_s18 }
  0x36   : > { %s334_s8 = sshll.u32 %s324_s12, 4  ;;  %s321_s17 = scalar_lea.sflag [#allocation12], %s2547_s19  ;;  %s335_s8 = int_to_ptr.vmem [resolvable:$true] %s334_s8 }
  0x37   : > { %1936 = dma.hbm_to_vmem [thread:$0]  (!%p2559_p2), %s333_s18, 256, %s335_s8, %s321_s17, %s3104_s9, %s3104_s9, %s3103_s4  }
  0x38   : > { %346 = sbr.rel (%p2492_p8) target bundleno = 1899 (0x76b), region = 44  ;;  %s2590_s0 = sand.u32 (!%p2492_p8), 1, %s2372_s22  }
  0x39   : > { %s2593_s3 = sshll.u32 (!%p2492_p8), %s2590_s0, 4  ;;  %s349_s23 = scalar_lea.sflag (!%p2492_p8), [#allocation3], %s2590_s0 }
  0x3a   : > { %s352_s25 = scalar_lea.vmem (!%p2492_p8), [#allocation2], %s2593_s3 }
  0x3d   : > { %2343 = dma.done.wait (%p2479_p4), %s349_s23, 256  }
  0x3e   : > { %2345 = vsyncadd (%p2479_p4), %s349_s23, 4294967040  ;;  %s358_s4 = sand.u32 1, %s2470_s27   ;;  %s362_s9 = scalar_lea.vmem [#allocation5], %s2593_s3 }
  0x3f   : > { %s359_s10 = scalar_lea.sflag [#allocation6], %s358_s4 }
  0x40   : > { %2347 = dma.done.wait (%p2479_p4), %s359_s10, 256  }
  0x41   : > { %2349 = vsyncadd (%p2479_p4), %s359_s10, 4294967040 }
  0x42   : > { %2351 = dma.done.wait (%p64_p1), [#allocation6], 2048  }
  0x43   : > { %2353 = vsyncadd (%p64_p1), [#allocation6], 4294965248 }
  0x44   : > { %2355 = dma.done.wait (%p64_p1), [#allocation9], 4096  }
  0x45   : > { %2357 = vsyncadd (%p64_p1), [#allocation9], 4294963200  ;;  %s384_s19 = scalar_lea.sflag [#allocation12], %s2590_s0  ;;  %s387_s20 = scalar_lea.vmem [#allocation11], %s2593_s3 }
  0x46   : > { %2359 = dma.done.wait (%p2479_p4), %s384_s19, 256  }
  0x47   : > { %2361 = vsyncadd (%p2479_p4), %s384_s19, 4294967040  ;;  %v490_v0 = vld [vmem:[#allocation8 + $0x78] sm:$0xff]  ;;  %v489_v1 = vld [vmem:[#allocation8 + $0x70] sm:$0xff]  ;;  %vm553_vm0 = vcmask 130048   ;;  %s2395_s27 = smov 112   ;;  %s2396_s29 = smov 80  }
  0x48   : > { %491 = vmatpush.msra.mxu1 %v490_v0  ;;  %v488_v2 = vld [vmem:[#allocation8 + $0x68] sm:$0xff]  ;;  %v451_v3 = vld [vmem:[#allocation7 + $0x78] sm:$0xff]  ;;  %v450_v4 = vld [vmem:[#allocation7 + $0x70] sm:$0xff]  ;;  %s2397_s28 = smov 96   ;;  %s2398_s7 = smov 64  }
  0x49   : > { %452 = vmatpush.msra.mxu0 %v451_v3  ;;  %v487_v5 = vld [vmem:[#allocation8 + $0x60] sm:$0xff]  ;;  %v449_v6 = vld [vmem:[#allocation7 + $0x68] sm:$0xff]  ;;  %v486_v7 = vld [vmem:[#allocation8 + $0x58] sm:$0xff]  ;;  %s2399_s16 = smov 48   ;;  %s2400_s11 = smov 32  }
  0x4a   : > { %492 = vmatpush.msra.mxu1 %v489_v1  ;;  %v448_v8 = vld [vmem:[#allocation7 + $0x60] sm:$0xff]  ;;  %v485_v9 = vld [vmem:[#allocation8 + $0x50] sm:$0xff]  ;;  %v447_v10 = vld [vmem:[#allocation7 + $0x58] sm:$0xff]  ;;  %s2401_s15 = smov 16   ;;  %s1894_s14 = sshll.u32 %s2380_s24, 4 }
  0x4b   : > { %453 = vmatpush.msra.mxu0 %v450_v4  ;;  %v484_v11 = vld [vmem:[#allocation8 + $0x48] sm:$0xff]  ;;  %v446_v12 = vld [vmem:[#allocation7 + $0x50] sm:$0xff]  ;;  %v483_v13 = vld [vmem:[#allocation8 + $0x40] sm:$0xff]  ;;  %s426_s2 = scalar_lea.vmem [#allocation13], %s2593_s3  ;;  %s1646_s8 = scalar_lea.hbm %s3076_s6, %s1894_s14 }
  0x4c   : > { %493 = vmatpush.msra.mxu1 %v488_v2  ;;  %v445_v14 = vld [vmem:[#allocation7 + $0x48] sm:$0xff]  ;;  %v529_v15 = vld [vmem:[#allocation10 + $0x78] sm:$0xff]  ;;  %v528_v16 = vld [vmem:[#allocation10 + $0x70] sm:$0xff]  ;;  %s1647_s17 = sshll.u32 %s426_s2, 4  ;;  %s1649_s24 = sshll.u32 %s1646_s8, 4  ;;  %s1648_s17 = int_to_ptr.vmem [resolvable:$true] %s1647_s17  ;;  %s1650_s24 = int_to_ptr.hbm [resolvable:$true] %s1649_s24 }
  0x4d   : > { %454 = vmatpush.msra.mxu0 %v449_v6  ;;  %v482_v17 = vld [vmem:[#allocation8 + $0x38] sm:$0xff]  ;;  %v444_v18 = vld [vmem:[#allocation7 + $0x40] sm:$0xff]  ;;  %530 = vmatpush.msra.mxu2 %v529_v15  ;;  %v527_v19 = vld [vmem:[#allocation10 + $0x68] sm:$0xff]  ;;  %s1633_s3 = scalar_lea.sflag [#allocation4], %s2590_s0  ;;  %s2304_s23 = sshra.s32 %s1650_s24, 4  ;;  %s2305_s23 = int_to_ptr.hbm [resolvable:$true] %s2304_s23 }
  0x4e   : > { %494 = vmatpush.msra.mxu1 %v487_v5  ;;  %v481_v20 = vld [vmem:[#allocation8 + $0x30] sm:$0xff]  ;;  %v443_v21 = vld [vmem:[#allocation7 + $0x38] sm:$0xff]  ;;  %v526_v22 = vld [vmem:[#allocation10 + $0x60] sm:$0xff]  ;;  %p2311_p10 = scmp.lt.s32.totalorder %s2305_s23, %s3076_s6 }
  0x4f   : > { %455 = vmatpush.msra.mxu0 %v448_v8  ;;  %531 = vmatpush.msra.mxu2 %v528_v16  ;;  %v480_v23 = vld [vmem:[#allocation8 + $0x28] sm:$0xff]  ;;  %v442_v24 = vld [vmem:[#allocation7 + $0x30] sm:$0xff]  ;;  %v525_v25 = vld [vmem:[#allocation10 + $0x58] sm:$0xff] }
  0x50   : > { %495 = vmatpush.msra.mxu1 %v486_v7  ;;  %v479_v26 = vld [vmem:[#allocation8 + $0x20] sm:$0xff]  ;;  %v441_v27 = vld [vmem:[#allocation7 + $0x28] sm:$0xff]  ;;  %v524_v28 = vld [vmem:[#allocation10 + $0x50] sm:$0xff] }
  0x51   : > { %456 = vmatpush.msra.mxu0 %v447_v10  ;;  %532 = vmatpush.msra.mxu2 %v527_v19  ;;  %v478_v29 = vld [vmem:[#allocation8 + $0x18] sm:$0xff]  ;;  %v440_v30 = vld [vmem:[#allocation7 + $0x20] sm:$0xff]  ;;  %v523_v31 = vld [vmem:[#allocation10 + $0x48] sm:$0xff] }
  0x52   : > { %496 = vmatpush.msra.mxu1 %v485_v9  ;;  %v477_v32 = vld [vmem:[#allocation8 + $0x10] sm:$0xff]  ;;  %v439_v33 = vld [vmem:[#allocation7 + $0x18] sm:$0xff]  ;;  %v522_v34 = vld [vmem:[#allocation10 + $0x40] sm:$0xff] }
  0x53   : > { %457 = vmatpush.msra.mxu0 %v446_v12  ;;  %533 = vmatpush.msra.mxu2 %v526_v22  ;;  %v476_v35 = vld [vmem:[#allocation8 + $0x8] sm:$0xff]  ;;  %v438_v36 = vld [vmem:[#allocation7 + $0x10] sm:$0xff]  ;;  %v521_v37 = vld [vmem:[#allocation10 + $0x38] sm:$0xff] }
  0x54   : > { %497 = vmatpush.msra.mxu1 %v484_v11  ;;  %v475_v38 = vld [vmem:[#allocation8] sm:$0xff]  ;;  %v437_v39 = vld [vmem:[#allocation7 + $0x8] sm:$0xff]  ;;  %v520_v41 = vld [vmem:[#allocation10 + $0x30] sm:$0xff] }
  0x55   : > { %458 = vmatpush.msra.mxu0 %v445_v14  ;;  %534 = vmatpush.msra.mxu2 %v525_v25  ;;  %v432_v40 = vld [vmem:[%s362_s9] sm:$0xff]  ;;  %v519_v44 = vld [vmem:[#allocation10 + $0x28] sm:$0xff]  ;;  %v517_v46 = vld [vmem:[#allocation10 + $0x18] sm:$0xff] }
  0x56   : > { %498 = vmatpush.msra.mxu1 %v483_v13  ;;  %v436_v42 = vld [vmem:[#allocation7] sm:$0xff]  ;;  %v433_v47 = vld [vmem:[%s362_s9 + $0x8] sm:$0xff]  ;;  %v516_v48 = vld [vmem:[#allocation10 + $0x10] sm:$0xff]  ;;  %s2310_s9 = scalar_lea.hbm %s3076_s6, 32 }
  0x57   : > { %459 = vmatpush.msra.mxu0 %v444_v18  ;;  %535 = vmatpush.msra.mxu2 %v524_v28  ;;  %v430_v43 = vld [vmem:[%s352_s25] sm:$0xff]  ;;  %v431_v49 = vld [vmem:[%s352_s25 + $0x8] sm:$0xff]  ;;  %s2306_s25 = scalar_lea.hbm %s2305_s23, 16 }
  0x58   : > { %499 = vmatpush.msra.mxu1 %v482_v17  ;;  %v518_v45 = vld [vmem:[#allocation10 + $0x20] sm:$0xff]  ;;  %v515_v50 = vld [vmem:[#allocation10 + $0x8] sm:$0xff]  ;;  %p2307_p1 = scmp.ne.s32.totalorder %s2305_s23, %s2306_s25  ;;  %p2312_p12 = scmp.lt.s32.totalorder %s2310_s9, %s2306_s25 }
  0x59   : > { %460 = vmatpush.msra.mxu0 %v443_v21  ;;  %536 = vmatpush.msra.mxu2 %v523_v31  ;;  %v514_v51 = vld [vmem:[#allocation10] sm:$0xff]  ;;  %v2659_v2 = vld [vmem:[%s387_s20 + $0x8] sm:$0xff] }
  0x5a   : > { %500 = vmatpush.msra.mxu1 %v481_v20  ;;  %v2653_v61 = vld [vmem:[%s387_s20] sm:$0xff]  ;;  %p2308_p4 = pnand %p2307_p1, %p2539_p5  ;;  %p2313_p13 = por %p2312_p12, %p2311_p10 }
  0x5b   : > { %461 = vmatpush.msra.mxu0 %v442_v24  ;;  %537 = vmatpush.msra.mxu2 %v522_v34 }
  0x5c   : > { %501 = vmatpush.msra.mxu1 %v480_v23  ;;  %p2309_p8 = pneg %p2308_p4 }
  0x5d   : > { %462 = vmatpush.msra.mxu0 %v441_v27  ;;  %538 = vmatpush.msra.mxu2 %v521_v37 }
  0x5e   : > { %502 = vmatpush.msra.mxu1 %v479_v26  ;;  %p2314_p0 = pnand %p2313_p13, %p2309_p8 }
  0x5f   : > { %463 = vmatpush.msra.mxu0 %v440_v30  ;;  %539 = vmatpush.msra.mxu2 %v520_v41 }
  0x60   : > { %503 = vmatpush.msra.mxu1 %v478_v29 }
  0x61   : > { %464 = vmatpush.msra.mxu0 %v439_v33  ;;  %540 = vmatpush.msra.mxu2 %v519_v44 }
  0x62   : > { %504 = vmatpush.msra.mxu1 %v477_v32 }
  0x63   : > { %465 = vmatpush.msra.mxu0 %v438_v36  ;;  %541 = vmatpush.msra.mxu2 %v518_v45 }
  0x64   : > { %505 = vmatpush.msra.mxu1 %v476_v35 }
  0x65   : > { %466 = vmatpush.msra.mxu0 %v437_v39  ;;  %542 = vmatpush.msra.mxu2 %v517_v46 }
  0x66   : > { %506 = vmatpush.msra.mxu1 %v475_v38 }
  0x67   : > { %507 = vmatmul.f32.vlgmr.msra.gmra.mxu1 %v432_v40  ;;  %467 = vmatpush.msra.mxu0 %v436_v42 }
  0x68   : > { %468 = vmatmul.f32.vlgmr.msra.gmra.mxu0 %v430_v43  ;;  %543 = vmatpush.msra.mxu2 %v516_v48 }
  0x6a   : > { %544 = vmatpush.msra.mxu2 %v515_v50 }
  0x6c   : > { %545 = vmatpush.msra.mxu2 %v514_v51 }
  0x6d   : > { %546 = vmatmul.f32.vlgmr.msra.gmra.mxu2 %v432_v40 }
  0x6f   : > { %510 = vmatmul.f32.gmra.mxu1 %v433_v47 }
  0x70   : > { %471 = vmatmul.f32.gmra.mxu0 %v431_v49 }
  0x75   : > { %549 = vmatmul.f32.gmra.mxu2 %v433_v47 }
  0xe4   : > { %v2629_v52 = vpop.f32.mrf.mxu1 }
  0xe5   : > { %v2637_v54 = vpop.f32.mrf.mxu0 }
  0xec   : > { %v2631_v53 = vpop.f32.mrf.mxu1 }
  0xed   : > { %676 = vrot.lane.b32.xlu2 %v2631_v53, %s2395_s27  ;;  %1838 = vmatpush.xpose.msk.msra.mxu3 %vm553_vm0, %v2631_v53  ;;  %v2645_v56 = vpop.f32.mrf.mxu0 }
  0xf0   : > { %v547_v55 = vpop.f32.mrf.mxu2 }
  0xf1   : > { %1839 = vmatpush.xpose.msk.msra.mxu3 %vm553_vm0, %v2629_v52 }
  0xf4   : > { %1840 = vmatmul.msk.f32.vlgmr.msra.gmra.mxu3 %vm553_vm0, %v2637_v54 }
  0xf5   : > { %674 = vrot.lane.b32.xlu2 %v2629_v52, %s2395_s27 }
  0xf8   : > { %v550_v57 = vpop.f32.mrf.mxu2 }
  0xf9   : > { %661 = vmatpush.msrb.mxu3 %v550_v57  ;;  %v2671_v16 = vpack.i.bf16 %v547_v55, %v550_v57 }
  0xfb   : > { %662 = vmatpush.msrb.mxu3 %v547_v55 }
  0xfc   : > { %1841 = vmatmul.msk.f32.gmra.mxu3 %vm553_vm0, %v2645_v56 }
 0x147   : > { %v677_v58 = vpop.permute.xlu2 %676 }
 0x148   : > { %1844 = vmatpush.xpose.msk.msra.mxu3 %vm553_vm0, %v677_v58 }
 0x14f   : > { %v675_v59 = vpop.permute.xlu2 %674 }
 0x150   : > { %1845 = vmatpush.xpose.msk.msra.mxu3 %vm553_vm0, %v675_v59 }
 0x177   : > { %v583_v60 = vpop.f32.mrf.mxu3 }
 0x178   : > { %v589_v62 = vmul.f32 0.25, %v583_v60 }
 0x17a   : > { %v591_v63 = vadd.f32 %v589_v62, %v2653_v61 }
 0x17c   : > { %v593_v0 = vsel %vm553_vm0, %v591_v63, -inf }
 0x17d   : > { %594 = vmax.xlane.f32.xlu0 %v593_v0 }
 0x17f   : > { %v586_v1 = vpop.f32.mrf.mxu3 }
 0x180   : > { %v590_v3 = vmul.f32 0.25, %v586_v1 }
 0x182   : > { %v592_v4 = vadd.f32 %v590_v3, %v2659_v2 }
 0x184   : > { %v596_v5 = vsel %vm553_vm0, %v592_v4, -inf }
 0x185   : > { %597 = vmax.xlane.f32.xlu0 %v596_v5 }
 0x199   : > { %670 = vrot.lane.b32.xlu0 %v2637_v54, %s2395_s27 }
 0x1a1   : > { %924 = vrot.lane.b32.xlu0 %v2637_v54, %s2396_s29 }
 0x1f0   : > { %v595_v6 = vpop.xlane.xlu0 %594 }
 0x1f1   : > { %v599_v7 = vsub.f32 %v591_v63, %v595_v6 }
 0x1f3   : > { %v601_v8 = vmul.f32 1.442695, %v599_v7 }
 0x1f5   : > { %2046 = vpow2.f32 %v601_v8 }
 0x1f8   : > { %v598_v9 = vpop.xlane.xlu0 %597 }
 0x1f9   : > { %v600_v10 = vsub.f32 %v592_v4, %v598_v9 }
 0x1fb   : > { %v2047_v11 = vpop.eup %2046  ;;  %v603_v12 = vmul.f32 1.442695, %v600_v10 }
 0x1fc   : > { %v605_v13 = vsel %vm553_vm0, %v2047_v11, 0.0 }
 0x1fd   : > { %2048 = vpow2.f32 %v603_v12  ;;  %606 = vadd.xlane.f32.xlu1 %v605_v13 }
 0x203   : > { %v2049_v14 = vpop.eup %2048 }
 0x204   : > { %v608_v15 = vsel %vm553_vm0, %v2049_v14, 0.0 }
 0x205   : > { %609 = vadd.xlane.f32.xlu1 %v608_v15 }
 0x20b   : > { %v671_v42 = vpop.permute.xlu0 %670 }
 0x213   : > { %v925_v49 = vpop.permute.xlu0 %924 }
 0x21e   : > { %672 = vrot.lane.b32.xlu1 %v2645_v56, %s2395_s27 }
 0x226   : > { %2012 = vrot.lane.b32.xlu1 %v2671_v16, %s2395_s27 }
 0x22e   : > { %804 = vrot.lane.b32.xlu1 %v2631_v53, %s2397_s28 }
 0x236   : > { %930 = vrot.lane.b32.xlu1 %v2631_v53, %s2396_s29 }
 0x23e   : > { %928 = vrot.lane.b32.xlu1 %v2629_v52, %s2396_s29 }
 0x246   : > { %798 = vrot.lane.b32.xlu1 %v2637_v54, %s2397_s28 }
 0x24e   : > { %800 = vrot.lane.b32.xlu1 %v2645_v56, %s2397_s28 }
 0x256   : > { %1056 = vrot.lane.b32.xlu1 %v2631_v53, %s2398_s7 }
 0x25e   : > { %1054 = vrot.lane.b32.xlu1 %v2629_v52, %s2398_s7 }
 0x266   : > { %1176 = vrot.lane.b32.xlu1 %v2637_v54, %s2399_s16 }
 0x26e   : > { %1308 = vrot.lane.b32.xlu1 %v2631_v53, %s2400_s11 }
 0x270   : > { %v607_v17 = vpop.xlane.xlu1 %606 }
 0x271   : > { %2050 = vrcp.f32 %v607_v17  ;;  %v622_v22 = vand.u32 2147483648, %v607_v17  ;;  %v620_v24 = vand.u32 2147483647, %v607_v17  ;;  %vm616_vm2 = vweird.f32 %v607_v17 }
 0x273   : > { %v623_v27 = vor.u32 1.1754944e-38, %v622_v22  ;;  %vm621_vm4 = vcmp.eq.f32.partialorder %v620_v24, 8.507059e+37 }
 0x276   : > { %1432 = vrot.lane.b32.xlu1 %v2629_v52, %s2401_s15 }
 0x277   : > { %v2051_v18 = vpop.eup %2050 }
 0x278   : > { %v612_v19 = vmul.f32 %v2051_v18, %v607_v17  ;;  %v610_v20 = vpop.xlane.xlu1 %609  ;;  %vm617_vm1 = vweird.f32 %v2051_v18 }
 0x279   : > { %2052 = vrcp.f32 %v610_v20  ;;  %vm618_vm3 = vmor %vm616_vm2, %vm617_vm1  ;;  %v636_v33 = vand.u32 2147483648, %v610_v20  ;;  %v634_v35 = vand.u32 2147483647, %v610_v20  ;;  %vm630_vm6 = vweird.f32 %v610_v20 }
 0x27a   : > { %v613_v21 = vsub.f32 1.0, %v612_v19 }
 0x27b   : > { %v637_v37 = vor.u32 1.1754944e-38, %v636_v33  ;;  %vm635_vm8 = vcmp.eq.f32.partialorder %v634_v35, 8.507059e+37 }
 0x27c   : > { %v614_v23 = vmul.f32 %v2051_v18, %v613_v21 }
 0x27e   : > { %v615_v25 = vadd.f32 %v2051_v18, %v614_v23  ;;  %1304 = vrot.lane.b32.xlu1 %v2645_v56, %s2400_s11 }
 0x27f   : > { %v2053_v26 = vpop.eup %2052 }
 0x280   : > { %v626_v28 = vmul.f32 %v2053_v26, %v610_v20  ;;  %v619_v29 = vsel %vm618_vm3, %v2051_v18, %v615_v25  ;;  %vm631_vm5 = vweird.f32 %v2053_v26 }
 0x281   : > { %v624_v30 = vsel %vm621_vm4, %v623_v27, %v619_v29  ;;  %vm632_vm7 = vmor %vm630_vm6, %vm631_vm5 }
 0x282   : > { %v627_v31 = vsub.f32 1.0, %v626_v28  ;;  %v639_v32 = vmul.f32 %v2047_v11, %v624_v30 }
 0x284   : > { %v628_v34 = vmul.f32 %v2053_v26, %v627_v31  ;;  %1842 = vmatmul.msk.f32.vlgmr.msrb.gmra.mxu3 %vm553_vm0, %v639_v32 }
 0x286   : > { %v629_v36 = vadd.f32 %v2053_v26, %v628_v34 }
 0x288   : > { %v633_v38 = vsel %vm632_vm7, %v2053_v26, %v629_v36 }
 0x289   : > { %v638_v39 = vsel %vm635_vm8, %v637_v37, %v633_v38 }
 0x28a   : > { %v640_v40 = vmul.f32 %v2049_v14, %v638_v39 }
 0x28c   : > { %1843 = vmatmul.msk.f32.gmra.mxu3 %vm553_vm0, %v640_v40 }
 0x290   : > { %v673_v41 = vpop.permute.xlu1 %672 }
 0x294   : > { %1846 = vmatmul.msk.f32.vlgmr.msra.gmra.mxu3 %vm553_vm0, %v671_v42 }
 0x298   : > { %v2013_v43 = vpop.permute.xlu1 %2012 }
 0x299   : > { %v2014_v44 = vunpack.i.l.bf16 %v2013_v43  ;;  %v2015_v45 = vunpack.i.h.bf16 %v2013_v43 }
 0x29b   : > { %1895 = vmatpush.msrb.mxu1 %v2014_v44  ;;  %789 = vmatpush.msrb.mxu0 %v2014_v44 }
 0x29c   : > { %1847 = vmatmul.msk.f32.gmra.mxu3 %vm553_vm0, %v673_v41 }
 0x29d   : > { %1896 = vmatpush.msrb.mxu1 %v2015_v45  ;;  %790 = vmatpush.msrb.mxu0 %v2015_v45 }
 0x2a0   : > { %v805_v46 = vpop.permute.xlu1 %804 }
 0x2a1   : > { %1850 = vmatpush.xpose.msk.msra.mxu1 %vm553_vm0, %v805_v46 }
 0x2a8   : > { %v931_v47 = vpop.permute.xlu1 %930 }
 0x2a9   : > { %1856 = vmatpush.xpose.msk.msrb.mxu3 %vm553_vm0, %v931_v47 }
 0x2b0   : > { %v929_v48 = vpop.permute.xlu1 %928 }
 0x2b1   : > { %1857 = vmatpush.xpose.msk.msrb.mxu3 %vm553_vm0, %v929_v48 }
 0x2b4   : > { %1858 = vmatmul.msk.f32.vlgmr.msrb.gmra.mxu3 %vm553_vm0, %v925_v49 }
 0x2b8   : > { %v2727_v62 = vpop.permute.xlu1 %798 }
 0x2c0   : > { %v2732_v5 = vpop.permute.xlu1 %800 }
 0x2c8   : > { %v1057_v9 = vpop.permute.xlu1 %1056 }
 0x2d0   : > { %v1055_v12 = vpop.permute.xlu1 %1054 }
 0x2d8   : > { %v1177_v14 = vpop.permute.xlu1 %1176 }
 0x2e0   : > { %v1309_v18 = vpop.permute.xlu1 %1308 }
 0x2e8   : > { %v1433_v20 = vpop.permute.xlu1 %1432 }
 0x2f0   : > { %v1305_v47 = vpop.permute.xlu1 %1304 }
 0x307   : > { %v2705_v50 = vpop.f32.mrf.mxu3 }
 0x30f   : > { %v2707_v51 = vpop.f32.mrf.mxu3 }
 0x317   : > { %v703_v55 = vpop.f32.mrf.mxu3 }
 0x318   : > { %v709_v21 = vmul.f32 0.25, %v703_v55 }
 0x31a   : > { %v2753_v22 = vadd.f32 %v709_v21, %v2653_v61 }
 0x31f   : > { %v706_v57 = vpop.f32.mrf.mxu3 }
 0x320   : > { %v710_v58 = vmul.f32 0.25, %v706_v57 }
 0x322   : > { %v712_v59 = vadd.f32 %v710_v58, %v2659_v2 }
 0x324   : > { %v716_v60 = vsel %vm553_vm0, %v712_v59, -inf }
 0x325   : > { %717 = vmax.xlane.f32.xlu2 %v716_v60 }
 0x337   : > { %v957_v63 = vpop.f32.mrf.mxu3 }
 0x338   : > { %v963_v0 = vmul.f32 0.25, %v957_v63 }
 0x33a   : > { %v2730_v4 = vadd.f32 %v963_v0, %v2653_v61 }
 0x33d   : > { %802 = vrot.lane.b32.xlu2 %v2629_v52, %s2397_s28 }
 0x345   : > { %926 = vrot.lane.b32.xlu2 %v2645_v56, %s2396_s29 }
 0x34d   : > { %1182 = vrot.lane.b32.xlu2 %v2631_v53, %s2399_s16 }
 0x355   : > { %1180 = vrot.lane.b32.xlu2 %v2629_v52, %s2399_s16 }
 0x35d   : > { %1052 = vrot.lane.b32.xlu2 %v2645_v56, %s2398_s7 }
 0x365   : > { %1434 = vrot.lane.b32.xlu2 %v2631_v53, %s2401_s15  ;;  %v967_v53 = vsel %vm553_vm0, %v2730_v4, -inf }
 0x36d   : > { %1302 = vrot.lane.b32.xlu2 %v2637_v54, %s2400_s11 }
 0x375   : > { %1430 = vrot.lane.b32.xlu2 %v2645_v56, %s2401_s15 }
 0x398   : > { %v718_v1 = vpop.xlane.xlu2 %717 }
 0x399   : > { %v720_v3 = vsub.f32 %v712_v59, %v718_v1 }
 0x39b   : > { %v723_v6 = vmul.f32 1.442695, %v720_v3 }
 0x39d   : > { %2054 = vpow2.f32 %v723_v6 }
 0x39e   : > { %968 = vmax.xlane.f32.xlu2 %v967_v53 }
 0x3a0   : > { %v803_v7 = vpop.permute.xlu2 %802 }
 0x3a1   : > { %1851 = vmatpush.xpose.msk.msra.mxu1 %vm553_vm0, %v803_v7 }
 0x3a3   : > { %v2055_v8 = vpop.eup %2054 }
 0x3a4   : > { %v728_v10 = vsel %vm553_vm0, %v2055_v8, 0.0 }
 0x3a5   : > { %729 = vadd.xlane.f32.xlu0 %v728_v10 }
 0x3a8   : > { %v927_v11 = vpop.permute.xlu2 %926 }
 0x3a9   : > { %1859 = vmatmul.msk.f32.gmra.mxu3 %vm553_vm0, %v927_v11 }
 0x3b0   : > { %v1183_v13 = vpop.permute.xlu2 %1182 }
 0x3b1   : > { %1868 = vmatpush.xpose.msk.msra.mxu3 %vm553_vm0, %v1183_v13 }
 0x3b8   : > { %v1181_v15 = vpop.permute.xlu2 %1180 }
 0x3b9   : > { %1050 = vrot.lane.b32.xlu0 %v2637_v54, %s2398_s7  ;;  %1869 = vmatpush.xpose.msk.msra.mxu3 %vm553_vm0, %v1181_v15 }
 0x3bc   : > { %1870 = vmatmul.msk.f32.vlgmr.msra.gmra.mxu3 %vm553_vm0, %v1177_v14 }
 0x3c0   : > { %v1053_v17 = vpop.permute.xlu2 %1052 }
 0x3c1   : > { %1178 = vrot.lane.b32.xlu0 %v2645_v56, %s2399_s16  ;;  %v713_v56 = vsel %vm553_vm0, %v2753_v22, -inf }
 0x3c8   : > { %v1435_v19 = vpop.permute.xlu2 %1434 }
 0x3c9   : > { %1306 = vrot.lane.b32.xlu0 %v2629_v52, %s2400_s11  ;;  %1880 = vmatpush.xpose.msk.msrb.mxu3 %vm553_vm0, %v1435_v19 }
 0x3cd   : > { %1881 = vmatpush.xpose.msk.msrb.mxu3 %vm553_vm0, %v1433_v20 }
 0x3d0   : > { %v1303_v42 = vpop.permute.xlu2 %1302 }
 0x3d1   : > { %1428 = vrot.lane.b32.xlu0 %v2637_v54, %s2401_s15 }
 0x3d8   : > { %v1431_v46 = vpop.permute.xlu2 %1430 }
 0x3fb   : > { %714 = vmax.xlane.f32.xlu0 %v713_v56 }
 0x411   : > { %v969_v48 = vpop.xlane.xlu2 %968 }
 0x418   : > { %v730_v23 = vpop.xlane.xlu0 %729 }
 0x419   : > { %2056 = vrcp.f32 %v730_v23  ;;  %v756_v26 = vand.u32 2147483648, %v730_v23  ;;  %v754_v28 = vand.u32 2147483647, %v730_v23  ;;  %vm750_vm10 = vweird.f32 %v730_v23 }
 0x41b   : > { %v757_v54 = vor.u32 1.1754944e-38, %v756_v26  ;;  %vm755_vm12 = vcmp.eq.f32.partialorder %v754_v28, 8.507059e+37 }
 0x41f   : > { %v2057_v24 = vpop.eup %2056 }
 0x420   : > { %v746_v52 = vmul.f32 %v2057_v24, %v730_v23  ;;  %vm751_vm9 = vweird.f32 %v2057_v24 }
 0x421   : > { %vm752_vm11 = vmor %vm750_vm10, %vm751_vm9 }
 0x422   : > { %v747_v25 = vsub.f32 1.0, %v746_v52 }
 0x424   : > { %v748_v27 = vmul.f32 %v2057_v24, %v747_v25 }
 0x426   : > { %v749_v29 = vadd.f32 %v2057_v24, %v748_v27 }
 0x428   : > { %v753_v30 = vsel %vm752_vm11, %v2057_v24, %v749_v29 }
 0x429   : > { %v758_v31 = vsel %vm755_vm12, %v757_v54, %v753_v30 }
 0x42a   : > { %v760_v32 = vmul.f32 %v2055_v8, %v758_v31 }
 0x42b   : > { %v1051_v33 = vpop.permute.xlu0 %1050 }
 0x42c   : > { %1849 = vmatmul.msk.f32.vlgmr.msrb.gmra.mxu1 %vm553_vm0, %v760_v32  ;;  %v960_v34 = vpop.f32.mrf.mxu3 }
 0x42d   : > { %v964_v35 = vmul.f32 0.25, %v960_v34  ;;  %1862 = vmatpush.xpose.msk.msrb.mxu1 %vm553_vm0, %v1057_v9 }
 0x42f   : > { %v966_v36 = vadd.f32 %v964_v35, %v2659_v2 }
 0x431   : > { %1863 = vmatpush.xpose.msk.msrb.mxu1 %vm553_vm0, %v1055_v12  ;;  %v970_v37 = vsel %vm553_vm0, %v966_v36, -inf }
 0x432   : > { %971 = vmax.xlane.f32.xlu2 %v970_v37 }
 0x433   : > { %v1179_v38 = vpop.permute.xlu0 %1178 }
 0x434   : > { %1852 = vmatmul.msk.f32.vlgmr.msra.gmra.mxu1 %vm553_vm0, %v2727_v62  ;;  %1871 = vmatmul.msk.f32.gmra.mxu3 %vm553_vm0, %v1179_v38 }
 0x435   : > { %1874 = vmatpush.xpose.msk.msra.mxu1 %vm553_vm0, %v1309_v18 }
 0x43b   : > { %v1307_v39 = vpop.permute.xlu0 %1306 }
 0x43c   : > { %1853 = vmatmul.msk.f32.gmra.mxu1 %vm553_vm0, %v2732_v5 }
 0x43d   : > { %1875 = vmatpush.xpose.msk.msra.mxu1 %vm553_vm0, %v1307_v39 }
 0x43f   : > { %v1209_v40 = vpop.f32.mrf.mxu3 }
 0x440   : > { %v1215_v41 = vmul.f32 0.25, %v1209_v40 }
 0x442   : > { %v1217_v43 = vadd.f32 %v1215_v41, %v2653_v61 }
 0x443   : > { %v1429_v44 = vpop.permute.xlu0 %1428 }
 0x444   : > { %1864 = vmatmul.msk.f32.vlgmr.msrb.gmra.mxu1 %vm553_vm0, %v1051_v33  ;;  %1882 = vmatmul.msk.f32.vlgmr.msrb.gmra.mxu3 %vm553_vm0, %v1429_v44  ;;  %v1219_v45 = vsel %vm553_vm0, %v1217_v43, -inf }
 0x445   : > { %1220 = vmax.xlane.f32.xlu0 %v1219_v45 }
 0x44c   : > { %1865 = vmatmul.msk.f32.gmra.mxu1 %vm553_vm0, %v1053_v17  ;;  %1883 = vmatmul.msk.f32.gmra.mxu3 %vm553_vm0, %v1431_v46  ;;  %v973_v17 = vsub.f32 %v2730_v4, %v969_v48 }
 0x44e   : > { %v975_v21 = vmul.f32 1.442695, %v973_v17 }
 0x454   : > { %1876 = vmatmul.msk.f32.vlgmr.msra.gmra.mxu1 %vm553_vm0, %v1303_v42 }
 0x45c   : > { %1877 = vmatmul.msk.f32.gmra.mxu1 %vm553_vm0, %v1305_v47 }
 0x46e   : > { %v715_v62 = vpop.xlane.xlu0 %714 }
 0x46f   : > { %v719_v6 = vsub.f32 %v2753_v22, %v715_v62 }
 0x471   : > { %v721_v10 = vmul.f32 1.442695, %v719_v6 }
 0x4a5   : > { %v972_v55 = vpop.xlane.xlu2 %971 }
 0x4a6   : > { %v974_v57 = vsub.f32 %v966_v36, %v972_v55 }
 0x4a8   : > { %v977_v58 = vmul.f32 1.442695, %v974_v57 }
 0x4a9   : > { %v2777_v49 = vpop.f32.mrf.mxu1 }
 0x4aa   : > { %2058 = vpow2.f32 %v977_v58 }
 0x4ab   : > { %2060 = vpow2.f32 %v721_v10 }
 0x4b0   : > { %v2784_v3 = vpop.eup %2058 }
 0x4b1   : > { %v831_v63 = vpop.f32.mrf.mxu1  ;;  %v982_v9 = vsel %vm553_vm0, %v2784_v3, 0.0  ;;  %v2797_v23 = vpop.eup %2060 }
 0x4b2   : > { %v837_v7 = vmul.f32 0.25, %v831_v63  ;;  %v725_v25 = vsel %vm553_vm0, %v2797_v23, 0.0 }
 0x4b4   : > { %v2790_v14 = vadd.f32 %v837_v7, %v2653_v61 }
 0x4b6   : > { %v841_v18 = vsel %vm553_vm0, %v2790_v14, -inf }
 0x4b7   : > { %v1212_v59 = vpop.f32.mrf.mxu3 }
 0x4b8   : > { %v1216_v60 = vmul.f32 0.25, %v1212_v59  ;;  %v1221_v5 = vpop.xlane.xlu0 %1220 }
 0x4b9   : > { %v834_v53 = vpop.f32.mrf.mxu1  ;;  %v1225_v8 = vsub.f32 %v1217_v43, %v1221_v5 }
 0x4ba   : > { %v2780_v0 = vadd.f32 %v1216_v60, %v2659_v2  ;;  %v838_v30 = vmul.f32 0.25, %v834_v53 }
 0x4bb   : > { %v1227_v12 = vmul.f32 1.442695, %v1225_v8 }
 0x4bc   : > { %v1222_v1 = vsel %vm553_vm0, %v2780_v0, -inf  ;;  %v2817_v33 = vadd.f32 %v838_v30, %v2659_v2 }
 0x4bd   : > { %1223 = vmax.xlane.f32.xlu1 %v1222_v1  ;;  %2062 = vpow2.f32 %v1227_v12 }
 0x4be   : > { %2064 = vpow2.f32 %v975_v21  ;;  %v844_v36 = vsel %vm553_vm0, %v2817_v33, -inf }
 0x4c1   : > { %v1083_v20 = vpop.f32.mrf.mxu1 }
 0x4c2   : > { %v1089_v26 = vmul.f32 0.25, %v1083_v20 }
 0x4c3   : > { %v2799_v24 = vpop.eup %2062 }
 0x4c4   : > { %v1231_v27 = vsel %vm553_vm0, %v2799_v24, 0.0  ;;  %v2810_v29 = vpop.eup %2064  ;;  %v1091_v54 = vadd.f32 %v1089_v26, %v2653_v61 }
 0x4c5   : > { %983 = vadd.xlane.f32.xlu1 %v982_v9  ;;  %v979_v31 = vsel %vm553_vm0, %v2810_v29, 0.0 }
 0x4c6   : > { %v1093_v32 = vsel %vm553_vm0, %v1091_v54, -inf }
 0x4c7   : > { %v1461_v11 = vpop.f32.mrf.mxu3 }
 0x4c8   : > { %v1467_v13 = vmul.f32 0.25, %v1461_v11 }
 0x4c9   : > { %v1086_v28 = vpop.f32.mrf.mxu1 }
 0x4ca   : > { %v1469_v15 = vadd.f32 %v1467_v13, %v2653_v61  ;;  %v1090_v39 = vmul.f32 0.25, %v1086_v28 }
 0x4cc   : > { %v1471_v19 = vsel %vm553_vm0, %v1469_v15, -inf  ;;  %v2831_v40 = vadd.f32 %v1090_v39, %v2659_v2 }
 0x4cd   : > { %842 = vmax.xlane.f32.xlu1 %v841_v18  ;;  %1472 = vmax.xlane.f32.xlu2 %v1471_v19 }
 0x4ce   : > { %v1096_v41 = vsel %vm553_vm0, %v2831_v40, -inf }
 0x4cf   : > { %v1464_v22 = vpop.f32.mrf.mxu3 }
 0x4d0   : > { %v1468_v56 = vmul.f32 0.25, %v1464_v22 }
 0x4d1   : > { %v1335_v34 = vpop.f32.mrf.mxu1 }
 0x4d2   : > { %v2802_v52 = vadd.f32 %v1468_v56, %v2659_v2  ;;  %v1341_v35 = vmul.f32 0.25, %v1335_v34 }
 0x4d4   : > { %v1474_v4 = vsel %vm553_vm0, %v2802_v52, -inf  ;;  %v2822_v37 = vadd.f32 %v1341_v35, %v2653_v61 }
 0x4d5   : > { %1475 = vmax.xlane.f32.xlu0 %v1474_v4  ;;  %726 = vadd.xlane.f32.xlu2 %v725_v25 }
 0x4d6   : > { %1232 = vadd.xlane.f32.xlu1 %v1231_v27  ;;  %v1345_v38 = vsel %vm553_vm0, %v2822_v37, -inf }
 0x4d9   : > { %v1338_v62 = vpop.f32.mrf.mxu1 }
 0x4da   : > { %v1342_v1 = vmul.f32 0.25, %v1338_v62 }
 0x4dc   : > { %v2856_v10 = vadd.f32 %v1342_v1, %v2659_v2 }
 0x4dd   : > { %980 = vadd.xlane.f32.xlu0 %v979_v31 }
 0x4de   : > { %1094 = vmax.xlane.f32.xlu1 %v1093_v32  ;;  %v1348_v21 = vsel %vm553_vm0, %v2856_v10, -inf }
 0x4e5   : > { %845 = vmax.xlane.f32.xlu0 %v844_v36 }
 0x4ed   : > { %1346 = vmax.xlane.f32.xlu0 %v1345_v38  ;;  %2017 = vrot.lane.b32.xlu2 %v2671_v16, %s2397_s28 }
 0x501   : > { %2022 = vrot.lane.b32.xlu0 %v2671_v16, %s2396_s29 }
 0x516   : > { %1097 = vmax.xlane.f32.xlu2 %v1096_v41 }
 0x52e   : > { %2027 = vrot.lane.b32.xlu2 %v2671_v16, %s2398_s7 }
 0x530   : > { %v1224_v61 = vpop.xlane.xlu1 %1223 }
 0x531   : > { %v1226_v42 = vsub.f32 %v2780_v0, %v1224_v61 }
 0x533   : > { %v1229_v43 = vmul.f32 1.442695, %v1226_v42 }
 0x535   : > { %2066 = vpow2.f32 %v1229_v43 }
 0x538   : > { %v2838_v44 = vpop.xlane.xlu1 %983 }
 0x539   : > { %vm1004_vm7 = vweird.f32 %v2838_v44 }
 0x53b   : > { %v2840_v45 = vpop.eup %2066 }
 0x53c   : > { %v1234_v46 = vsel %vm553_vm0, %v2840_v45, 0.0 }
 0x53d   : > { %1235 = vadd.xlane.f32.xlu1 %v1234_v46 }
 0x540   : > { %v843_v47 = vpop.xlane.xlu1 %842  ;;  %v1473_v48 = vpop.xlane.xlu2 %1472 }
 0x541   : > { %v1477_v55 = vsub.f32 %v1469_v15, %v1473_v48  ;;  %v847_v63 = vsub.f32 %v2790_v14, %v843_v47 }
 0x543   : > { %v1479_v57 = vmul.f32 1.442695, %v1477_v55  ;;  %v849_v53 = vmul.f32 1.442695, %v847_v63 }
 0x545   : > { %2068 = vpow2.f32 %v1479_v57 }
 0x548   : > { %v727_v58 = vpop.xlane.xlu2 %726  ;;  %v2844_v59 = vpop.xlane.xlu0 %1475 }
 0x549   : > { %2070 = vrcp.f32 %v727_v58  ;;  %v2846_v60 = vpop.xlane.xlu1 %1232  ;;  %v742_v14 = vand.u32 2147483648, %v727_v58  ;;  %v740_v18 = vand.u32 2147483647, %v727_v58  ;;  %vm736_vm14 = vweird.f32 %v727_v58 }
 0x54a   : > { %2072 = vpow2.f32 %v849_v53  ;;  %vm1242_vm11 = vweird.f32 %v2846_v60 }
 0x54b   : > { %v2849_v0 = vpop.eup %2068  ;;  %v743_v2 = vor.u32 1.1754944e-38, %v742_v14  ;;  %vm741_vm1 = vcmp.eq.f32.partialorder %v740_v18, 8.507059e+37 }
 0x54c   : > { %v1483_v5 = vsel %vm553_vm0, %v2849_v0, 0.0 }
 0x54d   : > { %1484 = vadd.xlane.f32.xlu1 %v1483_v5 }
 0x54f   : > { %v2071_v6 = vpop.eup %2070 }
 0x550   : > { %v732_v7 = vmul.f32 %v2071_v6, %v727_v58  ;;  %v2018_v8 = vpop.permute.xlu2 %2017  ;;  %v2853_v9 = vpop.xlane.xlu0 %980  ;;  %vm737_vm13 = vweird.f32 %v2071_v6 }
 0x551   : > { %v1095_v11 = vpop.xlane.xlu1 %1094  ;;  %v2019_v15 = vunpack.i.l.bf16 %v2018_v8  ;;  %v2020_v20 = vunpack.i.h.bf16 %v2018_v8  ;;  %vm738_vm15 = vmor %vm736_vm14, %vm737_vm13  ;;  %v2861_v25 = vpop.eup %2072  ;;  %v996_v55 = vand.u32 2147483648, %v2853_v9  ;;  %vm990_vm3 = vweird.f32 %v2853_v9 }
 0x552   : > { %v733_v12 = vsub.f32 1.0, %v732_v7  ;;  %v1099_v13 = vsub.f32 %v1091_v54, %v1095_v11  ;;  %v853_v31 = vsel %vm553_vm0, %v2861_v25, 0.0  ;;  %v994_v57 = vand.u32 2147483647, %v2853_v9 }
 0x553   : > { %915 = vmatpush.msrb.mxu2 %v2019_v15  ;;  %v997_v63 = vor.u32 1.1754944e-38, %v996_v55  ;;  %v1010_v7 = vand.u32 2147483648, %v2838_v44 }
 0x554   : > { %v734_v17 = vmul.f32 %v2071_v6, %v733_v12  ;;  %v1101_v19 = vmul.f32 1.442695, %v1099_v13  ;;  %vm995_vm5 = vcmp.eq.f32.partialorder %v994_v57, 8.507059e+37 }
 0x555   : > { %1349 = vmax.xlane.f32.xlu1 %v1348_v21  ;;  %916 = vmatpush.msrb.mxu2 %v2020_v20  ;;  %v1011_v13 = vor.u32 1.1754944e-38, %v1010_v7  ;;  %v1478_v21 = vsub.f32 %v2802_v52, %v2844_v59 }
 0x556   : > { %v735_v22 = vadd.f32 %v2071_v6, %v734_v17  ;;  %2074 = vpow2.f32 %v1101_v19 }
 0x557   : > { %2076 = vrcp.f32 %v2853_v9 }
 0x558   : > { %v846_v56 = vpop.xlane.xlu0 %845  ;;  %v739_v4 = vsel %vm738_vm15, %v2071_v6, %v735_v22 }
 0x559   : > { %v848_v26 = vsub.f32 %v2817_v33, %v846_v56  ;;  %v744_v27 = vsel %vm741_vm1, %v743_v2, %v739_v4  ;;  %v1481_v2 = vmul.f32 1.442695, %v1478_v21 }
 0x55a   : > { %v759_v28 = vmul.f32 %v2797_v23, %v744_v27 }
 0x55b   : > { %v851_v54 = vmul.f32 1.442695, %v848_v26 }
 0x55c   : > { %v2865_v30 = vpop.eup %2074  ;;  %1848 = vmatmul.msk.f32.vlgmr.msrb.gmra.mxu0 %vm553_vm0, %v759_v28 }
 0x55d   : > { %2078 = vpow2.f32 %v851_v54  ;;  %v1105_v32 = vsel %vm553_vm0, %v2865_v30, 0.0  ;;  %v2077_v34 = vpop.eup %2076  ;;  %854 = vadd.xlane.f32.xlu1 %v853_v31 }
 0x55e   : > { %1106 = vadd.xlane.f32.xlu0 %v1105_v32  ;;  %2080 = vrcp.f32 %v2838_v44  ;;  %v986_v23 = vmul.f32 %v2077_v34, %v2853_v9  ;;  %vm991_vm2 = vweird.f32 %v2077_v34  ;;  %v1008_v9 = vand.u32 2147483647, %v2838_v44 }
 0x55f   : > { %vm992_vm4 = vmor %vm990_vm3, %vm991_vm2 }
 0x560   : > { %v1347_v33 = vpop.xlane.xlu0 %1346  ;;  %v987_v41 = vsub.f32 1.0, %v986_v23  ;;  %vm1009_vm9 = vcmp.eq.f32.partialorder %v1008_v9, 8.507059e+37 }
 0x561   : > { %v1351_v35 = vsub.f32 %v2822_v37, %v1347_v33 }
 0x562   : > { %v988_v43 = vmul.f32 %v2077_v34, %v987_v41 }
 0x563   : > { %v2875_v36 = vpop.eup %2078  ;;  %v1353_v38 = vmul.f32 1.442695, %v1351_v35 }
 0x564   : > { %v856_v39 = vsel %vm553_vm0, %v2875_v36, 0.0  ;;  %v2081_v61 = vpop.eup %2080  ;;  %v989_v37 = vadd.f32 %v2077_v34, %v988_v43 }
 0x565   : > { %2082 = vpow2.f32 %v1353_v38  ;;  %857 = vadd.xlane.f32.xlu2 %v856_v39  ;;  %v1000_v42 = vmul.f32 %v2081_v61, %v2838_v44  ;;  %vm1005_vm6 = vweird.f32 %v2081_v61 }
 0x566   : > { %v993_v62 = vsel %vm992_vm4, %v2077_v34, %v989_v37  ;;  %vm1006_vm8 = vmor %vm1004_vm7, %vm1005_vm6 }
 0x567   : > { %v1001_v48 = vsub.f32 1.0, %v1000_v42  ;;  %v998_v5 = vsel %vm995_vm5, %v997_v63, %v993_v62 }
 0x568   : > { %v1013_v11 = vmul.f32 %v2810_v29, %v998_v5 }
 0x569   : > { %v1002_v58 = vmul.f32 %v2081_v61, %v1001_v48 }
 0x56b   : > { %v2880_v46 = vpop.eup %2082  ;;  %v1003_v53 = vadd.f32 %v2081_v61, %v1002_v58 }
 0x56c   : > { %v1357_v47 = vsel %vm553_vm0, %v2880_v46, 0.0 }
 0x56d   : > { %1358 = vadd.xlane.f32.xlu0 %v1357_v47  ;;  %v1007_v12 = vsel %vm1006_vm8, %v2081_v61, %v1003_v53  ;;  %v1246_v61 = vand.u32 2147483647, %v2846_v60 }
 0x56e   : > { %v1012_v14 = vsel %vm1009_vm9, %v1011_v13, %v1007_v12 }
 0x56f   : > { %v1014_v15 = vmul.f32 %v2784_v3, %v1012_v14  ;;  %vm1247_vm13 = vcmp.eq.f32.partialorder %v1246_v61, 8.507059e+37 }
 0x573   : > { %v2023_v1 = vpop.permute.xlu0 %2022 }
 0x574   : > { %v2024_v6 = vunpack.i.l.bf16 %v2023_v1  ;;  %v2025_v8 = vunpack.i.h.bf16 %v2023_v1 }
 0x576   : > { %1041 = vmatpush.msra.mxu0 %v2024_v6 }
 0x578   : > { %1042 = vmatpush.msra.mxu0 %v2025_v8 }
 0x579   : > { %1860 = vmatmul.msk.f32.vlgmr.msra.gmra.mxu0 %vm553_vm0, %v1013_v11 }
 0x57d   : > { %2032 = vrot.lane.b32.xlu2 %v2671_v16, %s2399_s16 }
 0x581   : > { %2042 = vrot.lane.b32.xlu0 %v2671_v16, %s2401_s15  ;;  %1861 = vmatmul.msk.f32.gmra.mxu0 %vm553_vm0, %v1014_v15 }
 0x589   : > { %v1098_v29 = vpop.xlane.xlu2 %1097 }
 0x58a   : > { %v1100_v44 = vsub.f32 %v2831_v40, %v1098_v29 }
 0x58c   : > { %v1103_v17 = vmul.f32 1.442695, %v1100_v44 }
 0x58e   : > { %2084 = vpow2.f32 %v1103_v17 }
 0x58f   : > { %2086 = vpow2.f32 %v1481_v2 }
 0x590   : > { %2088 = vrcp.f32 %v2846_v60 }
 0x591   : > { %v2028_v18 = vpop.permute.xlu2 %2027 }
 0x592   : > { %v2029_v19 = vunpack.i.l.bf16 %v2028_v18  ;;  %v2030_v22 = vunpack.i.h.bf16 %v2028_v18 }
 0x594   : > { %v2899_v20 = vpop.eup %2084  ;;  %1167 = vmatpush.msra.mxu2 %v2029_v19 }
 0x595   : > { %v1108_v3 = vsel %vm553_vm0, %v2899_v20, 0.0  ;;  %v2905_v56 = vpop.eup %2086 }
 0x596   : > { %1168 = vmatpush.msra.mxu2 %v2030_v22  ;;  %1109 = vadd.xlane.f32.xlu1 %v1108_v3  ;;  %v1486_v40 = vsel %vm553_vm0, %v2905_v56, 0.0  ;;  %v2089_v59 = vpop.eup %2088 }
 0x597   : > { %v1238_v26 = vmul.f32 %v2089_v59, %v2846_v60  ;;  %vm1243_vm10 = vweird.f32 %v2089_v59 }
 0x598   : > { %vm1244_vm12 = vmor %vm1242_vm11, %vm1243_vm10 }
 0x599   : > { %v1239_v31 = vsub.f32 1.0, %v1238_v26 }
 0x59b   : > { %v1240_v32 = vmul.f32 %v2089_v59, %v1239_v31 }
 0x59d   : > { %v1241_v38 = vadd.f32 %v2089_v59, %v1240_v32 }
 0x59f   : > { %v1245_v47 = vsel %vm1244_vm12, %v2089_v59, %v1241_v38 }
 0x5a6   : > { %1487 = vadd.xlane.f32.xlu2 %v1486_v40 }
 0x5b0   : > { %v2909_v4 = vpop.xlane.xlu1 %1235 }
 0x5b1   : > { %2090 = vrcp.f32 %v2909_v4  ;;  %vm1256_vm15 = vweird.f32 %v2909_v4  ;;  %v1262_v9 = vand.u32 2147483648, %v2909_v4  ;;  %v1260_v14 = vand.u32 2147483647, %v2909_v4 }
 0x5b3   : > { %v1263_v31 = vor.u32 1.1754944e-38, %v1262_v9  ;;  %vm1261_vm10 = vcmp.eq.f32.partialorder %v1260_v14, 8.507059e+37 }
 0x5b7   : > { %v2917_v33 = vpop.eup %2090 }
 0x5b8   : > { %v1252_v41 = vmul.f32 %v2917_v33, %v2909_v4  ;;  %vm1257_vm2 = vweird.f32 %v2917_v33 }
 0x5b9   : > { %vm2952_vm6 = vmor %vm1256_vm15, %vm1257_vm2 }
 0x5ba   : > { %v1253_v55 = vsub.f32 1.0, %v1252_v41 }
 0x5c0   : > { %v2912_v52 = vpop.xlane.xlu1 %1484 }
 0x5c1   : > { %vm1494_vm15 = vweird.f32 %v2912_v52 }
 0x5c8   : > { %v1350_v27 = vpop.xlane.xlu1 %1349 }
 0x5c9   : > { %v1352_v28 = vsub.f32 %v2856_v10, %v1350_v27  ;;  %v1248_v10 = vand.u32 2147483648, %v2846_v60  ;;  %v1254_v60 = vmul.f32 %v2917_v33, %v1253_v55 }
 0x5cb   : > { %v1355_v54 = vmul.f32 1.442695, %v1352_v28  ;;  %v1249_v37 = vor.u32 1.1754944e-38, %v1248_v10 }
 0x5cd   : > { %2092 = vpow2.f32 %v1355_v54  ;;  %v1250_v62 = vsel %vm1247_vm13, %v1249_v37, %v1245_v47 }
 0x5ce   : > { %v1265_v11 = vmul.f32 %v2799_v24, %v1250_v62  ;;  %v1255_v24 = vadd.f32 %v2917_v33, %v1254_v60 }
 0x5d0   : > { %v855_v34 = vpop.xlane.xlu1 %854  ;;  %v1259_v54 = vsel %vm2952_vm6, %v2917_v33, %v1255_v24 }
 0x5d1   : > { %2094 = vrcp.f32 %v855_v34  ;;  %v2919_v23 = vpop.xlane.xlu0 %1106  ;;  %v868_v5 = vand.u32 2147483647, %v855_v34  ;;  %v870_v6 = vand.u32 2147483648, %v855_v34  ;;  %vm864_vm1 = vweird.f32 %v855_v34 }
 0x5d2   : > { %2096 = vrcp.f32 %v2919_v23  ;;  %v1122_v61 = vand.u32 2147483648, %v2919_v23  ;;  %vm1116_vm13 = vweird.f32 %v2919_v23  ;;  %v1120_v47 = vand.u32 2147483647, %v2919_v23 }
 0x5d3   : > { %v2921_v35 = vpop.eup %2092  ;;  %2098 = vrcp.f32 %v2912_v52  ;;  %vm869_vm4 = vcmp.eq.f32.partialorder %v868_v5, 8.507059e+37  ;;  %v871_v44 = vor.u32 1.1754944e-38, %v870_v6 }
 0x5d4   : > { %v1360_v39 = vsel %vm553_vm0, %v2921_v35, 0.0  ;;  %v1123_v55 = vor.u32 1.1754944e-38, %v1122_v61  ;;  %vm1121_vm2 = vcmp.eq.f32.partialorder %v1120_v47, 8.507059e+37 }
 0x5d5   : > { %1361 = vadd.xlane.f32.xlu1 %v1360_v39  ;;  %v1264_v39 = vsel %vm1261_vm10, %v1263_v31, %v1259_v54 }
 0x5d7   : > { %v2095_v42 = vpop.eup %2094 }
 0x5d8   : > { %v858_v43 = vpop.xlane.xlu2 %857  ;;  %v860_v48 = vmul.f32 %v2095_v42, %v855_v34  ;;  %v2932_v58 = vpop.eup %2096  ;;  %vm865_vm14 = vweird.f32 %v2095_v42 }
 0x5d9   : > { %2100 = vrcp.f32 %v858_v43  ;;  %v2934_v1 = vpop.eup %2098  ;;  %v1112_v8 = vmul.f32 %v2932_v58, %v2919_v23  ;;  %vm866_vm3 = vmor %vm864_vm1, %vm865_vm14  ;;  %v884_v19 = vand.u32 2147483648, %v858_v43  ;;  %v882_v40 = vand.u32 2147483647, %v858_v43  ;;  %v792_v37 = vpop.f32.mrf.mxu0 }
 0x5da   : > { %v861_v57 = vsub.f32 1.0, %v860_v48  ;;  %v1490_v15 = vmul.f32 %v2934_v1, %v2912_v52  ;;  %vm878_vm7 = vweird.f32 %v858_v43  ;;  %vm1117_vm11 = vweird.f32 %v2932_v58 }
 0x5db   : > { %v1113_v18 = vsub.f32 1.0, %v1112_v8  ;;  %v885_v32 = vor.u32 1.1754944e-38, %v884_v19  ;;  %vm883_vm9 = vcmp.eq.f32.partialorder %v882_v40, 8.507059e+37  ;;  %vm1495_vm12 = vweird.f32 %v2934_v1  ;;  %vm1118_vm14 = vmor %vm1116_vm13, %vm1117_vm11 }
 0x5dc   : > { %v862_v63 = vmul.f32 %v2095_v42, %v861_v57  ;;  %v1491_v59 = vsub.f32 1.0, %v1490_v15  ;;  %v1500_v48 = vand.u32 2147483648, %v2912_v52  ;;  %vm1496_vm1 = vmor %vm1494_vm15, %vm1495_vm12 }
 0x5de   : > { %v863_v7 = vadd.f32 %v2095_v42, %v862_v63  ;;  %v1492_v34 = vmul.f32 %v2934_v1, %v1491_v59  ;;  %v1501_v57 = vor.u32 1.1754944e-38, %v1500_v48 }
 0x5df   : > { %v2101_v53 = vpop.eup %2100 }
 0x5e0   : > { %v874_v12 = vmul.f32 %v2101_v53, %v858_v43  ;;  %v2033_v13 = vpop.permute.xlu2 %2032  ;;  %v867_v22 = vsel %vm866_vm3, %v2095_v42, %v863_v7  ;;  %vm879_vm5 = vweird.f32 %v2101_v53  ;;  %v2965_v41 = vpop.xlane.xlu0 %1358  ;;  %v1266_v42 = vmul.f32 %v2840_v45, %v1264_v39 }
 0x5e1   : > { %v2034_v29 = vunpack.i.l.bf16 %v2033_v13  ;;  %v2035_v21 = vunpack.i.h.bf16 %v2033_v13  ;;  %v872_v2 = vsel %vm869_vm4, %v871_v44, %v867_v22  ;;  %vm880_vm8 = vmor %vm878_vm7, %vm879_vm5  ;;  %v1493_v43 = vadd.f32 %v2934_v1, %v1492_v34 }
 0x5e2   : > { %v875_v17 = vsub.f32 1.0, %v874_v12  ;;  %v887_v26 = vmul.f32 %v2861_v25, %v872_v2  ;;  %v1114_v25 = vmul.f32 %v2932_v58, %v1113_v18  ;;  %v1374_v34 = vand.u32 2147483648, %v2965_v41 }
 0x5e3   : > { %1293 = vmatpush.msrb.mxu0 %v2034_v29  ;;  %v1497_v23 = vsel %vm1496_vm1, %v2934_v1, %v1493_v43  ;;  %vm1368_vm13 = vweird.f32 %v2965_v41 }
 0x5e4   : > { %v876_v3 = vmul.f32 %v2101_v53, %v875_v17  ;;  %1854 = vmatmul.msk.f32.vlgmr.msrb.gmra.mxu2 %vm553_vm0, %v887_v26  ;;  %v1115_v10 = vadd.f32 %v2932_v58, %v1114_v25 }
 0x5e5   : > { %1294 = vmatpush.msrb.mxu0 %v2035_v21 }
 0x5e6   : > { %1872 = vmatmul.msk.f32.vlgmr.msrb.gmra.mxu0 %vm553_vm0, %v1265_v11  ;;  %v877_v28 = vadd.f32 %v2101_v53, %v876_v3  ;;  %v1119_v45 = vsel %vm1118_vm14, %v2932_v58, %v1115_v10  ;;  %v1375_v10 = vor.u32 1.1754944e-38, %v1374_v34 }
 0x5e7   : > { %v1124_v62 = vsel %vm1121_vm2, %v1123_v55, %v1119_v45 }
 0x5e8   : > { %v881_v4 = vsel %vm880_vm8, %v2101_v53, %v877_v28 }
 0x5e9   : > { %v886_v38 = vsel %vm883_vm9, %v885_v32, %v881_v4 }
 0x5ea   : > { %v888_v33 = vmul.f32 %v2875_v36, %v886_v38  ;;  %v1498_v36 = vand.u32 2147483647, %v2912_v52  ;;  %v1139_v52 = vmul.f32 %v2865_v30, %v1124_v62 }
 0x5ec   : > { %1855 = vmatmul.msk.f32.gmra.mxu2 %vm553_vm0, %v888_v33  ;;  %vm1499_vm3 = vcmp.eq.f32.partialorder %v1498_v36, 8.507059e+37 }
 0x5ed   : > { %v1502_v60 = vsel %vm1499_vm3, %v1501_v57, %v1497_v23 }
 0x5ee   : > { %1873 = vmatmul.msk.f32.gmra.mxu0 %vm553_vm0, %v1266_v42  ;;  %2037 = vrot.lane.b32.xlu1 %v2671_v16, %s2400_s11  ;;  %v1517_v16 = vmul.f32 %v2849_v0, %v1502_v60 }
 0x5f3   : > { %v2043_v63 = vpop.permute.xlu0 %2042 }
 0x5f4   : > { %v2044_v5 = vunpack.i.l.bf16 %v2043_v63  ;;  %v2045_v6 = vunpack.i.h.bf16 %v2043_v63  ;;  %1866 = vmatmul.msk.f32.vlgmr.msra.gmra.mxu2 %vm553_vm0, %v1139_v52 }
 0x5f6   : > { %v1044_v58 = vpop.f32.mrf.mxu0  ;;  %1545 = vmatpush.msra.mxu0 %v2044_v5  ;;  %1556 = vrot.lane.b32.xlu1 %v792_v37, %s2401_s15 }
 0x5f7   : > { %1572 = vrot.lane.b32.xlu0 %v1044_v58, %s2399_s16 }
 0x5f8   : > { %1546 = vmatpush.msra.mxu0 %v2045_v6 }
 0x5f9   : > { %1884 = vmatmul.msk.f32.vlgmr.msra.gmra.mxu0 %vm553_vm0, %v1517_v16 }
 0x5fe   : > { %1558 = vrot.lane.b32.xlu1 %v2777_v49, %s2401_s15  ;;  %v1047_v1 = vpop.f32.mrf.mxu0 }
 0x606   : > { %1574 = vrot.lane.b32.xlu1 %v1047_v1, %s2399_s16 }
 0x609   : > { %v1110_v30 = vpop.xlane.xlu1 %1109 }
 0x60a   : > { %2102 = vrcp.f32 %v1110_v30  ;;  %v1136_v11 = vand.u32 2147483648, %v1110_v30  ;;  %v1134_v0 = vand.u32 2147483647, %v1110_v30  ;;  %vm1130_vm5 = vweird.f32 %v1110_v30 }
 0x60c   : > { %v1137_v13 = vor.u32 1.1754944e-38, %v1136_v11  ;;  %vm1135_vm7 = vcmp.eq.f32.partialorder %v1134_v0, 8.507059e+37 }
 0x610   : > { %v2103_v53 = vpop.eup %2102 }
 0x611   : > { %v1126_v7 = vmul.f32 %v2103_v53, %v1110_v30  ;;  %vm1131_vm4 = vweird.f32 %v2103_v53 }
 0x612   : > { %vm1132_vm6 = vmor %vm1130_vm5, %vm1131_vm4  ;;  %vm1612_vm5 = vcmask 261120  }
 0x613   : > { %v1127_v8 = vsub.f32 1.0, %v1126_v7 }
 0x615   : > { %v1128_v9 = vmul.f32 %v2103_v53, %v1127_v8 }
 0x617   : > { %v1129_v12 = vadd.f32 %v2103_v53, %v1128_v9 }
 0x619   : > { %v1488_v14 = vpop.xlane.xlu2 %1487  ;;  %v1133_v15 = vsel %vm1132_vm6, %v2103_v53, %v1129_v12  ;;  %vm1615_vm6 = vcmask 392192  }
 0x61a   : > { %2104 = vrcp.f32 %v1488_v14  ;;  %v1138_v49 = vsel %vm1135_vm7, %v1137_v13, %v1133_v15  ;;  %v1514_v18 = vand.u32 2147483648, %v1488_v14  ;;  %v1512_v21 = vand.u32 2147483647, %v1488_v14 }
 0x61b   : > { %v1140_v29 = vmul.f32 %v2899_v20, %v1138_v49  ;;  %vm1508_vm9 = vweird.f32 %v1488_v14  ;;  %2106 = vrcp.f32 %v2965_v41  ;;  %vm1618_vm7 = vcmask 523264  }
 0x61c   : > { %v1515_v3 = vor.u32 1.1754944e-38, %v1514_v18  ;;  %vm1513_vm11 = vcmp.eq.f32.partialorder %v1512_v21, 8.507059e+37 }
 0x61d   : > { %1867 = vmatmul.msk.f32.gmra.mxu2 %vm553_vm0, %v1140_v29 }
 0x620   : > { %v2105_v44 = vpop.eup %2104 }
 0x621   : > { %v1504_v17 = vmul.f32 %v2105_v44, %v1488_v14  ;;  %vm1509_vm8 = vweird.f32 %v2105_v44  ;;  %v2107_v26 = vpop.eup %2106 }
 0x622   : > { %vm1510_vm10 = vmor %vm1508_vm9, %vm1509_vm8  ;;  %v1364_v27 = vmul.f32 %v2107_v26, %v2965_v41  ;;  %vm1369_vm12 = vweird.f32 %v2107_v26  ;;  %vm1621_vm8 = vcmask 654336   ;;  %vm1624_vm9 = vcmask 785408  }
 0x623   : > { %v1505_v24 = vsub.f32 1.0, %v1504_v17  ;;  %vm1370_vm14 = vmor %vm1368_vm13, %vm1369_vm12 }
 0x624   : > { %v1365_v28 = vsub.f32 1.0, %v1364_v27 }
 0x625   : > { %v1506_v19 = vmul.f32 %v2105_v44, %v1505_v24 }
 0x626   : > { %v1366_v31 = vmul.f32 %v2107_v26, %v1365_v28 }
 0x627   : > { %v1507_v22 = vadd.f32 %v2105_v44, %v1506_v19 }
 0x628   : > { %v1367_v32 = vadd.f32 %v2107_v26, %v1366_v31 }
 0x629   : > { %v1511_v2 = vsel %vm1510_vm10, %v2105_v44, %v1507_v22  ;;  %vm1627_vm10 = vcmask 916480  }
 0x62a   : > { %v1516_v40 = vsel %vm1513_vm11, %v1515_v3, %v1511_v2  ;;  %v1371_v38 = vsel %vm1370_vm14, %v2107_v26, %v1367_v32 }
 0x62b   : > { %v1518_v59 = vmul.f32 %v2905_v56, %v1516_v40  ;;  %v1372_v56 = vand.u32 2147483647, %v2965_v41 }
 0x62d   : > { %1885 = vmatmul.msk.f32.gmra.mxu0 %vm553_vm0, %v1518_v59  ;;  %vm1373_vm15 = vcmp.eq.f32.partialorder %v1372_v56, 8.507059e+37 }
 0x62e   : > { %v1376_v61 = vsel %vm1373_vm15, %v1375_v10, %v1371_v38 }
 0x62f   : > { %v1391_v36 = vmul.f32 %v2880_v46, %v1376_v61 }
 0x648   : > { %v1362_v20 = vpop.xlane.xlu1 %1361 }
 0x649   : > { %2108 = vrcp.f32 %v1362_v20  ;;  %v1388_v48 = vand.u32 2147483648, %v1362_v20  ;;  %vm1382_vm2 = vweird.f32 %v1362_v20  ;;  %v1386_v41 = vand.u32 2147483647, %v1362_v20 }
 0x64b   : > { %v1389_v55 = vor.u32 1.1754944e-38, %v1388_v48  ;;  %vm1387_vm4 = vcmp.eq.f32.partialorder %v1386_v41, 8.507059e+37 }
 0x64f   : > { %v2109_v54 = vpop.eup %2108 }
 0x650   : > { %v1378_v25 = vmul.f32 %v2109_v54, %v1362_v20  ;;  %vm1383_vm1 = vweird.f32 %v2109_v54 }
 0x651   : > { %vm1384_vm3 = vmor %vm1382_vm2, %vm1383_vm1 }
 0x652   : > { %v1379_v4 = vsub.f32 1.0, %v1378_v25 }
 0x654   : > { %v1380_v39 = vmul.f32 %v2109_v54, %v1379_v4 }
 0x656   : > { %v1381_v47 = vadd.f32 %v2109_v54, %v1380_v39 }
 0x658   : > { %v1385_v45 = vsel %vm1384_vm3, %v2109_v54, %v1381_v47 }
 0x659   : > { %v1390_v57 = vsel %vm1387_vm4, %v1389_v55, %v1385_v45 }
 0x65a   : > { %v1392_v63 = vmul.f32 %v2921_v35, %v1390_v57 }
 0x660   : > { %v2038_v33 = vpop.permute.xlu1 %2037 }
 0x661   : > { %v2039_v42 = vunpack.i.l.bf16 %v2038_v33  ;;  %v2040_v37 = vunpack.i.h.bf16 %v2038_v33 }
 0x663   : > { %v1296_v43 = vpop.f32.mrf.mxu0  ;;  %1419 = vmatpush.msrb.mxu2 %v2039_v42 }
 0x664   : > { %1588 = vrot.lane.b32.xlu0 %v1296_v43, %s2396_s29 }
 0x665   : > { %1420 = vmatpush.msrb.mxu2 %v2040_v37 }
 0x666   : > { %1878 = vmatmul.msk.f32.vlgmr.msrb.gmra.mxu2 %vm553_vm0, %v1391_v36 }
 0x667   : > { %v918_v23 = vpop.f32.mrf.mxu2 }
 0x668   : > { %v1557_v16 = vpop.permute.xlu1 %1556 }
 0x669   : > { %v1573_v53 = vpop.permute.xlu0 %1572  ;;  %v1610_v0 = vsel %vm553_vm0, %v2705_v50, %v1557_v16 }
 0x66b   : > { %v1299_v62 = vpop.f32.mrf.mxu0 }
 0x66c   : > { %1590 = vrot.lane.b32.xlu2 %v1299_v62, %s2396_s29 }
 0x66e   : > { %1879 = vmatmul.msk.f32.gmra.mxu2 %vm553_vm0, %v1392_v63 }
 0x66f   : > { %v921_v60 = vpop.f32.mrf.mxu2 }
 0x670   : > { %1566 = vrot.lane.b32.xlu1 %v921_v60, %s2400_s11  ;;  %v1559_v1 = vpop.permute.xlu1 %1558 }
 0x671   : > { %v1611_v29 = vsel %vm553_vm0, %v2707_v51, %v1559_v1 }
 0x674   : > { %1564 = vrot.lane.b32.xlu2 %v918_v23, %s2400_s11 }
 0x676   : > { %v1548_v5 = vpop.f32.mrf.mxu0 }
 0x677   : > { %v1170_v46 = vpop.f32.mrf.mxu2 }
 0x678   : > { %1580 = vrot.lane.b32.xlu0 %v1170_v46, %s2398_s7  ;;  %v1575_v30 = vpop.permute.xlu1 %1574 }
 0x67c   : > { %1604 = vrot.lane.b32.xlu2 %v1548_v5, %s2395_s27 }
 0x6a0   : > { %v1173_v52 = vpop.f32.mrf.mxu2 }
 0x6a1   : > { %1582 = vrot.lane.b32.xlu1 %v1173_v52, %s2398_s7 }
 0x6aa   : > { %v1551_v35 = vpop.f32.mrf.mxu0 }
 0x6c6   : > { %v1591_v7 = vpop.permute.xlu2 %1590 }
 0x6ce   : > { %v1565_v9 = vpop.permute.xlu2 %1564 }
 0x6cf   : > { %v1613_v13 = vsel %vm1612_vm5, %v1610_v0, %v1565_v9 }
 0x6d0   : > { %v1616_v15 = vsel %vm1615_vm6, %v1613_v13, %v1573_v53 }
 0x6d6   : > { %v1589_v11 = vpop.permute.xlu0 %1588  ;;  %v1605_v17 = vpop.permute.xlu2 %1604 }
 0x6e2   : > { %v1567_v8 = vpop.permute.xlu1 %1566 }
 0x6e3   : > { %v1614_v24 = vsel %vm1612_vm5, %v1611_v29, %v1567_v8 }
 0x6e4   : > { %v1617_v51 = vsel %vm1615_vm6, %v1614_v24, %v1575_v30 }
 0x6e9   : > { %v1422_v6 = vpop.f32.mrf.mxu2 }
 0x6ea   : > { %1596 = vrot.lane.b32.xlu1 %v1422_v6, %s2397_s28  ;;  %v1581_v14 = vpop.permute.xlu0 %1580 }
 0x6eb   : > { %v1619_v49 = vsel %vm1618_vm7, %v1616_v15, %v1581_v14 }
 0x6ec   : > { %v1622_v50 = vsel %vm1621_vm8, %v1619_v49, %v1589_v11 }
 0x6f1   : > { %v1425_v58 = vpop.f32.mrf.mxu2 }
 0x6f2   : > { %1598 = vrot.lane.b32.xlu0 %v1425_v58, %s2397_s28  ;;  %1606 = vrot.lane.b32.xlu1 %v1551_v35, %s2395_s27 }
 0x713   : > { %v1583_v12 = vpop.permute.xlu1 %1582 }
 0x714   : > { %v1620_v21 = vsel %vm1618_vm7, %v1617_v51, %v1583_v12 }
 0x715   : > { %v1623_v3 = vsel %vm1621_vm8, %v1620_v21, %v1591_v7 }
 0x75c   : > { %v1597_v44 = vpop.permute.xlu1 %1596 }
 0x75d   : > { %v1625_v18 = vsel %vm1624_vm9, %v1622_v50, %v1597_v44 }
 0x75e   : > { %v1628_v19 = vsel %vm1627_vm10, %v1625_v18, %v1605_v17 }
 0x75f   : > { %1630 = vst [vmem:[%s426_s2] sm:$0xff] %v1628_v19 }
 0x764   : > { %v1599_v22 = vpop.permute.xlu0 %1598  ;;  %v1607_v2 = vpop.permute.xlu1 %1606 }
 0x765   : > { %v1626_v40 = vsel %vm1624_vm9, %v1623_v3, %v1599_v22 }
 0x766   : > { %v1629_v59 = vsel %vm1627_vm10, %v1626_v40, %v1607_v2 }
 0x767   : > { %1631 = vst [vmem:[%s426_s2 + $0x8] sm:$0xff] %v1629_v59 }
 0x768   : > { %2317 = shalt.err (!%p2314_p0)
}
 0x769   : > { %s2402_s0 = smov 128   ;;  %s2403_s27 = smov 8  }
 0x76a   : > { %1915 = dma.vmem_to_hbm [thread:$0]  (%p2539_p5), %s1648_s17, 256, %s1650_s24, %s1633_s3, %s2402_s0, %s2402_s0, %s2403_s27  }
 0x76b PF: > { %s1664_s29 = sand.u32 1, %s2368_s21   ;;  %p1938_p3 = pnand %p1820_p11, %p2484_p6 }
 0x76c   : > { %s1665_s28 = scalar_lea.sflag [#allocation4], %s1664_s29 }
 0x76d   : > { %p1939_p7 = pneg %p1938_p3 }
 0x76f   : > { %2363 = dma.done.wait (%p1939_p7), %s1665_s28, 256  }
 0x770   : > { %2365 = vsyncadd (%p1939_p7), %s1665_s28, 4294967040  ;;  %s29_s26 = sadd.s32 1, %s2388_s26   ;;  %s3107_s7 = sld [smem:[#allocation20_spill]] }
 0x771   : > { %p26_p9 = scmp.ge.s32.totalorder %s29_s26, 4   ;;  %s3108_s23 = sld [smem:[#allocation23_spill]] }
 0x772   : > { %s3109_s24 = sld [smem:[#allocation21_spill]]  ;;  %s3111_s21 = smov %s2372_s22 }
 0x773   : > { %s3110_s25 = sld [smem:[#allocation22_spill]]  ;;  %28 = sbr.rel (!%p26_p9) target bundleno = 16 (0x10), region = 127 }
 0x776   : > { %s3112_s22 = smov %s3107_s7 }
 0x778   :  { %1671 = vsyncpa [#allocation3], 1 }
 0x779   :  { %1673 = vsyncpa [#allocation3 + $0x1], 1 }
 0x77a   :  { %1674 = vsyncpa [#allocation6], 1 }
 0x77b   :  { %1676 = vsyncpa [#allocation6 + $0x1], 1 }
 0x77c   :  { %1677 = vsyncpa [#allocation9], 1 }
 0x77d   :  { %1678 = vsyncpa [#allocation12], 1 }
 0x77e   :  { %1680 = vsyncpa [#allocation12 + $0x1], 1 }
 0x77f   :  { %1681 = vsyncpa [#allocation4], 1 }
 0x780   :  { %1683 = vsyncpa [#allocation4 + $0x1], 1 }

</bundles_post_ra>
